<compile_context>
chip_gen: v6e
topology: v6e:2x2x1
jax: 0.10.0
libtpu: 0.0.40
codegen_flags: <defaults>
</compile_context>

<pallas_src>
import functools
import math

import jax
import jax.numpy as jnp
from jax.experimental import pallas as pl
from jax.experimental.pallas import tpu as pltpu


# ------------------------------ fused kernel --------------------------------


def _layernorm_f32(x, g, b, eps):
    mean = jnp.mean(x, axis=-1, keepdims=True)
    xc = x - mean
    var = jnp.mean(xc * xc, axis=-1, keepdims=True)
    return xc * jax.lax.rsqrt(var + eps) * g + b


def _fused_lm_kernel(x_ref,
                     wq_ref, bq_ref, wk_ref, bk_ref, wv_ref, bv_ref,
                     aw1_ref, ab1_ref, aw2_ref, ab2_ref,
                     ln1g_ref, ln1b_ref,
                     fw1_ref, fb1_ref, fw2_ref, fb2_ref,
                     ln2g_ref, ln2b_ref,
                     hw_ref, hb_ref,
                     logits_ref,
                     h_sc,
                     *, n_heads, eps):
    """Grid = (B, L). One step = one transformer block for one batch row-slab."""
    l = pl.program_id(1)

    # Layer 0: load this batch's embedded tokens into the resident activation.
    @pl.when(l == 0)
    def _():
        h_sc[...] = x_ref[...]

    x = h_sc[...]                               # (T, E) f32, VMEM-resident
    T = x.shape[0]

    # causal mask (diagonal always unmasked -> softmax rows are safe)
    row = jax.lax.broadcasted_iota(jnp.int32, (T, T), 0)
    col = jax.lax.broadcasted_iota(jnp.int32, (T, T), 1)
    causal = row >= col

    # ---- multi-head causal attention; head merge folded into aw1 matmuls ----
    att = jnp.zeros(x.shape, jnp.float32)
    for h in range(n_heads):
        q = jnp.dot(x, wq_ref[0, h], preferred_element_type=jnp.float32) + bq_ref[0, h]
        k = jnp.dot(x, wk_ref[0, h], preferred_element_type=jnp.float32) + bk_ref[0, h]
        v = jnp.dot(x, wv_ref[0, h], preferred_element_type=jnp.float32) + bv_ref[0, h]
        # scores are pre-scaled: 1/sqrt(d) folded into wq/bq at param prep
        s = jnp.dot(q, k.T, preferred_element_type=jnp.float32)      # (T, T)
        s = jnp.where(causal, s, -jnp.inf)
        m = jnp.max(s, axis=-1, keepdims=True)
        e = jnp.exp(s - m)
        p = e * pl.reciprocal(jnp.sum(e, axis=-1, keepdims=True), approx=True)
        o_h = jnp.dot(p, v, preferred_element_type=jnp.float32)      # (T, d)
        # concat-over-heads folded into the attention-FFN first linear
        att = att + jnp.dot(o_h, aw1_ref[0, h], preferred_element_type=jnp.float32)

    # attention-internal FFN: relu(att @ w1 + b1) @ w2 + b2
    att = jnp.maximum(att + ab1_ref[0], 0.0)
    att = jnp.dot(att, aw2_ref[0], preferred_element_type=jnp.float32) + ab2_ref[0]

    # TODO(synk): F.dropout(p=0.1) is stochastic; treated as identity (inference).
    out1 = _layernorm_f32(att + x, ln1g_ref[0], ln1b_ref[0], eps)

    h1 = jnp.maximum(
        jnp.dot(out1, fw1_ref[0], preferred_element_type=jnp.float32) + fb1_ref[0], 0.0)
    out2 = jnp.dot(h1, fw2_ref[0], preferred_element_type=jnp.float32) + fb2_ref[0]

    out = _layernorm_f32(out1 + out2, ln2g_ref[0], ln2b_ref[0], eps)
    h_sc[...] = out                             # carry activation to next layer

    # Final layer: apply the LM head and emit lane-dense (T, V) logits.
    @pl.when(l == pl.num_programs(1) - 1)
    def _():
        logits_ref[...] = (
            jnp.dot(out, hw_ref[...], preferred_element_type=jnp.float32)
            + hb_ref[...]).astype(logits_ref.dtype)


# ------------------------------ model wrapper --------------------------------


def lm_pallas_forward(kp, tokens, targets=None, *, n_heads,
                      label_smoothing=0.1, ln_eps=1e-5):
    B, T = tokens.shape
    E = kp["tok_emb"].shape[1]
    V = kp["head_w"].shape[1]
    L = kp["wq"].shape[0]
    H = n_heads
    d = E // H

    # embedding gather (parameter lookup) kept in plain JAX glue
    x2d = jnp.take(kp["tok_emb"], tokens.reshape(-1), axis=0)        # (B*T, E)

    x_map = lambda b, l: (b, 0)          # per-batch row slab, constant over l
    w4 = lambda b, l: (l, 0, 0, 0)       # per-layer 4-D weights
    w3 = lambda b, l: (l, 0, 0)          # per-layer 3-D weights
    hd = lambda b, l: (0, 0)             # shared LM-head weights

    in_specs = [
        pl.BlockSpec((T, E), x_map),            # x (embedded tokens)
        pl.BlockSpec((1, H, E, d), w4),         # wq  (scale folded in)
        pl.BlockSpec((1, H, 1, d), w4),         # bq
        pl.BlockSpec((1, H, E, d), w4),         # wk
        pl.BlockSpec((1, H, 1, d), w4),         # bk
        pl.BlockSpec((1, H, E, d), w4),         # wv
        pl.BlockSpec((1, H, 1, d), w4),         # bv
        pl.BlockSpec((1, H, d, E), w4),         # attn-ffn w1 (per-head rows)
        pl.BlockSpec((1, 1, E), w3),            # attn-ffn b1
        pl.BlockSpec((1, E, E), w3),            # attn-ffn w2
        pl.BlockSpec((1, 1, E), w3),            # attn-ffn b2
        pl.BlockSpec((1, 1, E), w3),            # ln1 gamma
        pl.BlockSpec((1, 1, E), w3),            # ln1 beta
        pl.BlockSpec((1, E, E), w3),            # ffn w1
        pl.BlockSpec((1, 1, E), w3),            # ffn b1
        pl.BlockSpec((1, E, E), w3),            # ffn w2
        pl.BlockSpec((1, 1, E), w3),            # ffn b2
        pl.BlockSpec((1, 1, E), w3),            # ln2 gamma
        pl.BlockSpec((1, 1, E), w3),            # ln2 beta
        pl.BlockSpec((E, V), hd),               # lm head weight
        pl.BlockSpec((1, V), hd),               # lm head bias
    ]

    logits2d = pl.pallas_call(
        functools.partial(_fused_lm_kernel, n_heads=H, eps=ln_eps),
        out_shape=jax.ShapeDtypeStruct((B * T, V), jnp.float32),
        grid_spec=pltpu.PrefetchScalarGridSpec(
            num_scalar_prefetch=0,
            grid=(B, L),
            in_specs=in_specs,
            out_specs=pl.BlockSpec((T, V), x_map),
            scratch_shapes=[pltpu.VMEM((T, E), jnp.float32)],
        ),
        compiler_params=pltpu.CompilerParams(
            dimension_semantics=("parallel", "arbitrary")),
    )(x2d,
      kp["wq"], kp["bq"], kp["wk"], kp["bk"], kp["wv"], kp["bv"],
      kp["aw1"], kp["ab1"], kp["aw2"], kp["ab2"],
      kp["ln1_g"], kp["ln1_b"],
      kp["fw1"], kp["fb1"], kp["fw2"], kp["fb2"],
      kp["ln2_g"], kp["ln2_b"],
      kp["head_w"], kp["head_b"])

    logits = logits2d.reshape(B, T, V)
    loss = None
    if targets is not None:
        # label-smoothed cross entropy (matches torch F.cross_entropy semantics)
        logp = jax.nn.log_softmax(logits2d.astype(jnp.float32), axis=-1)
        onehot = jax.nn.one_hot(targets.reshape(-1), V, dtype=jnp.float32)
        tdist = (1.0 - label_smoothing) * onehot + label_smoothing / V
        loss = -jnp.mean(jnp.sum(tdist * logp, axis=-1))
    return logits, loss


# ------------------------------ param init/prep ------------------------------


def init_raw_params(key, vocab_size, embedding_dim, n_layers):
    """Torch-layout parameters (qkv as one (E, 3E) matrix, etc.)."""
    E, V = embedding_dim, vocab_size

    def dense(k, shape, scale=0.02):
        return jax.random.normal(k, shape, jnp.float32) * scale

    def ffn_params(k):
        k1, k2 = jax.random.split(k)
        return {"w1": dense(k1, (E, E)), "b1": jnp.zeros((E,), jnp.float32),
                "w2": dense(k2, (E, E)), "b2": jnp.zeros((E,), jnp.float32)}

    blocks = []
    for layer in range(n_layers):
        kb = jax.random.fold_in(key, layer + 1)
        kq, kaf, kff = jax.random.split(kb, 3)
        blocks.append({
            "qkv_w": dense(kq, (E, 3 * E)),
            "qkv_b": jnp.zeros((3 * E,), jnp.float32),
            "attn_ffn": ffn_params(kaf),
            "ln1_g": jnp.ones((E,), jnp.float32),
            "ln1_b": jnp.zeros((E,), jnp.float32),
            "ffn": ffn_params(kff),
            "ln2_g": jnp.ones((E,), jnp.float32),
            "ln2_b": jnp.zeros((E,), jnp.float32),
        })

    ke, kh = jax.random.split(jax.random.fold_in(key, 0))
    return {
        "tok_emb": dense(ke, (V, E), scale=1.0),
        "blocks": blocks,
        "head_w": dense(kh, (E, V)),
        "head_b": jnp.zeros((V,), jnp.float32),
    }


def prepare_kernel_params(raw, n_heads):
    """Restack torch-layout params into (L, ...) arrays for the fused kernel.

    QKV columns follow the torch view(B,T,H,3d)+split convention: output
    feature h*3d + j is q (j<d), k (d<=j<2d) or v (2d<=j<3d) of head h.
    The 1/sqrt(d) attention scale is folded into wq / bq, and the
    attention-FFN first linear is split into per-head row slabs so the head
    re-merge happens as a matmul accumulation inside the kernel.
    """
    E = raw["tok_emb"].shape[1]
    H = n_heads
    d = E // H
    scale = jnp.float32(1.0 / math.sqrt(d))

    def one_layer(bp):
        w = bp["qkv_w"].reshape(E, H, 3, d)
        b = bp["qkv_b"].reshape(H, 3, d)
        return dict(
            wq=jnp.transpose(w[:, :, 0, :], (1, 0, 2)) * scale,   # (H, E, d)
            wk=jnp.transpose(w[:, :, 1, :], (1, 0, 2)),
            wv=jnp.transpose(w[:, :, 2, :], (1, 0, 2)),
            bq=b[:, 0, :][:, None, :] * scale,                    # (H, 1, d)
            bk=b[:, 1, :][:, None, :],
            bv=b[:, 2, :][:, None, :],
            aw1=bp["attn_ffn"]["w1"].reshape(H, d, E),            # (H, d, E)
            ab1=bp["attn_ffn"]["b1"][None, :],
            aw2=bp["attn_ffn"]["w2"],
            ab2=bp["attn_ffn"]["b2"][None, :],
            ln1_g=bp["ln1_g"][None, :], ln1_b=bp["ln1_b"][None, :],
            fw1=bp["ffn"]["w1"], fb1=bp["ffn"]["b1"][None, :],
            fw2=bp["ffn"]["w2"], fb2=bp["ffn"]["b2"][None, :],
            ln2_g=bp["ln2_g"][None, :], ln2_b=bp["ln2_b"][None, :],
        )

    layers = [one_layer(bp) for bp in raw["blocks"]]
    stacked = {k: jnp.stack([ly[k] for ly in layers], axis=0) for k in layers[0]}
    stacked["tok_emb"] = raw["tok_emb"]
    stacked["head_w"] = raw["head_w"]
    stacked["head_b"] = raw["head_b"][None, :]
    return stacked


# ---------------------------------- main -------------------------------------

if __name__ == "__main__":
    VOCAB, EMB, N_LAYERS, N_HEADS = 128, 128, 4, 4
    B, T = 2, 8

    key = jax.random.PRNGKey(0)
    kparam, ktok, ktgt = jax.random.split(key, 3)

    raw_params = init_raw_params(kparam, VOCAB, EMB, N_LAYERS)
    params = prepare_kernel_params(raw_params, N_HEADS)

    tokens = jax.random.randint(ktok, (B, T), 0, VOCAB, dtype=jnp.int32)
    targets = jax.random.randint(ktgt, (B, T), 0, VOCAB, dtype=jnp.int32)

    fwd = jax.jit(functools.partial(lm_pallas_forward, n_heads=N_HEADS,
                                    label_smoothing=0.1))
    logits, loss = fwd(params, tokens, targets)
    jax.block_until_ready(logits)
    jax.block_until_ready(loss)

    assert logits.shape == (B, T, VOCAB), logits.shape
    assert loss.shape == (), loss.shape
    assert bool(jnp.isfinite(loss)), loss
    print("KERNEL_OK")
</pallas_src>

<mosaic_0001>
module attributes {stable_mosaic.version = 11 : i64} {
  func.func @_fused_lm_kernel(%arg0: i32, %arg1: i32, %arg2: memref<8x128xf32, #tpu.memory_space<vmem>>, %arg3: memref<1x4x128x32xf32, #tpu.memory_space<vmem>>, %arg4: memref<1x4x1x32xf32, #tpu.memory_space<vmem>>, %arg5: memref<1x4x128x32xf32, #tpu.memory_space<vmem>>, %arg6: memref<1x4x1x32xf32, #tpu.memory_space<vmem>>, %arg7: memref<1x4x128x32xf32, #tpu.memory_space<vmem>>, %arg8: memref<1x4x1x32xf32, #tpu.memory_space<vmem>>, %arg9: memref<1x4x32x128xf32, #tpu.memory_space<vmem>>, %arg10: memref<1x1x128xf32, #tpu.memory_space<vmem>>, %arg11: memref<1x128x128xf32, #tpu.memory_space<vmem>>, %arg12: memref<1x1x128xf32, #tpu.memory_space<vmem>>, %arg13: memref<1x1x128xf32, #tpu.memory_space<vmem>>, %arg14: memref<1x1x128xf32, #tpu.memory_space<vmem>>, %arg15: memref<1x128x128xf32, #tpu.memory_space<vmem>>, %arg16: memref<1x1x128xf32, #tpu.memory_space<vmem>>, %arg17: memref<1x128x128xf32, #tpu.memory_space<vmem>>, %arg18: memref<1x1x128xf32, #tpu.memory_space<vmem>>, %arg19: memref<1x1x128xf32, #tpu.memory_space<vmem>>, %arg20: memref<1x1x128xf32, #tpu.memory_space<vmem>>, %arg21: memref<128x128xf32, #tpu.memory_space<vmem>>, %arg22: memref<1x128xf32, #tpu.memory_space<vmem>>, %arg23: memref<8x128xf32, #tpu.memory_space<vmem>>, %arg24: memref<8x128xf32, #tpu.memory_space<vmem>>) attributes {dimension_semantics = [#tpu.dimension_semantics<parallel>, #tpu.dimension_semantics<arbitrary>], iteration_bounds = array<i64: 2, 4>, scalar_prefetch = 0 : i64, scratch_operands = 1 : i64, tpu.core_type = #tpu.core_type<tc>, window_params = [{transform_indices = @transform_0, window_bounds = array<i64: 8, 128>}, {transform_indices = @transform_1, window_bounds = array<i64: 1, 4, 128, 32>}, {transform_indices = @transform_2, window_bounds = array<i64: 1, 4, 1, 32>}, {transform_indices = @transform_3, window_bounds = array<i64: 1, 4, 128, 32>}, {transform_indices = @transform_4, window_bounds = array<i64: 1, 4, 1, 32>}, {transform_indices = @transform_5, window_bounds = array<i64: 1, 4, 128, 32>}, {transform_indices = @transform_6, window_bounds = array<i64: 1, 4, 1, 32>}, {transform_indices = @transform_7, window_bounds = array<i64: 1, 4, 32, 128>}, {transform_indices = @transform_8, window_bounds = array<i64: 1, 1, 128>}, {transform_indices = @transform_9, window_bounds = array<i64: 1, 128, 128>}, {transform_indices = @transform_10, window_bounds = array<i64: 1, 1, 128>}, {transform_indices = @transform_11, window_bounds = array<i64: 1, 1, 128>}, {transform_indices = @transform_12, window_bounds = array<i64: 1, 1, 128>}, {transform_indices = @transform_13, window_bounds = array<i64: 1, 128, 128>}, {transform_indices = @transform_14, window_bounds = array<i64: 1, 1, 128>}, {transform_indices = @transform_15, window_bounds = array<i64: 1, 128, 128>}, {transform_indices = @transform_16, window_bounds = array<i64: 1, 1, 128>}, {transform_indices = @transform_17, window_bounds = array<i64: 1, 1, 128>}, {transform_indices = @transform_18, window_bounds = array<i64: 1, 1, 128>}, {pipeline_mode = #tpu.pipeline_mode<synchronous>, transform_indices = @transform_19, window_bounds = array<i64: 128, 128>}, {pipeline_mode = #tpu.pipeline_mode<synchronous>, transform_indices = @transform_20, window_bounds = array<i64: 1, 128>}, {transform_indices = @transform_21, window_bounds = array<i64: 8, 128>}]} {
    %c0_i32 = arith.constant 0 : i32
    %0 = arith.cmpi eq, %arg1, %c0_i32 : i32
    %1 = arith.extui %0 : i1 to i32
    %c0_i32_0 = arith.constant 0 : i32
    %2 = arith.cmpi ne, %1, %c0_i32_0 : i32
    scf.if %2 {
      %c0_198 = arith.constant 0 : index
      %c0_199 = arith.constant 0 : index
      %251 = vector.load %arg2[%c0_198, %c0_199] : memref<8x128xf32, #tpu.memory_space<vmem>>, vector<8x128xf32>
      %c0_200 = arith.constant 0 : index
      %c0_201 = arith.constant 0 : index
      %252 = vector.load %arg24[%c0_200, %c0_201] : memref<8x128xf32, #tpu.memory_space<vmem>>, vector<8x128xf32>
      tpu.vector_store %arg24[%c0_200, %c0_201], %251 {strides = array<i32>} : memref<8x128xf32, #tpu.memory_space<vmem>>, vector<8x128xf32>,
    } else {
    }
    %c0 = arith.constant 0 : index
    %c0_1 = arith.constant 0 : index
    %3 = vector.load %arg24[%c0, %c0_1] : memref<8x128xf32, #tpu.memory_space<vmem>>, vector<8x128xf32>
    %4 = tpu.iota {dimensions = array<i32: 0>} : vector<8x8xi32>
    %5 = tpu.iota {dimensions = array<i32: 1>} : vector<8x8xi32>
    %6 = arith.cmpi sge, %4, %5 : vector<8x8xi32>
    %cst = arith.constant 0.000000e+00 : f32
    %7 = vector.broadcast %cst : f32 to vector<8x128xf32>
    %c0_2 = arith.constant 0 : index
    %c0_3 = arith.constant 0 : index
    %c0_4 = arith.constant 0 : index
    %c0_5 = arith.constant 0 : index
    %8 = vector.load %arg3[%c0_2, %c0_3, %c0_4, %c0_5] : memref<1x4x128x32xf32, #tpu.memory_space<vmem>>, vector<1x1x128x32xf32>
    %9 = vector.shape_cast %8 : vector<1x1x128x32xf32> to vector<128x32xf32>
    %cst_6 = arith.constant dense<0.000000e+00> : vector<8x32xf32>
    %10 = tpu.matmul %3, %9, %cst_6 {dimension_numbers = #tpu.dot_dimension_numbers<[1], [0], [0], [1], [0, 0, 1, 1], [], []>} : vector<8x128xf32>, vector<128x32xf32>, vector<8x32xf32> -> vector<8x32xf32>
    %c0_7 = arith.constant 0 : index
    %c0_8 = arith.constant 0 : index
    %c0_9 = arith.constant 0 : index
    %c0_10 = arith.constant 0 : index
    %11 = vector.load %arg4[%c0_7, %c0_8, %c0_9, %c0_10] : memref<1x4x1x32xf32, #tpu.memory_space<vmem>>, vector<1x1x1x32xf32>
    %12 = vector.shape_cast %11 : vector<1x1x1x32xf32> to vector<1x32xf32>
    %13 = vector.broadcast %12 : vector<1x32xf32> to vector<8x32xf32>
    %14 = arith.addf %10, %13 : vector<8x32xf32>
    %c0_11 = arith.constant 0 : index
    %c0_12 = arith.constant 0 : index
    %c0_13 = arith.constant 0 : index
    %c0_14 = arith.constant 0 : index
    %15 = vector.load %arg5[%c0_11, %c0_12, %c0_13, %c0_14] : memref<1x4x128x32xf32, #tpu.memory_space<vmem>>, vector<1x1x128x32xf32>
    %16 = vector.shape_cast %15 : vector<1x1x128x32xf32> to vector<128x32xf32>
    %cst_15 = arith.constant dense<0.000000e+00> : vector<8x32xf32>
    %17 = tpu.matmul %3, %16, %cst_15 {dimension_numbers = #tpu.dot_dimension_numbers<[1], [0], [0], [1], [0, 0, 1, 1], [], []>} : vector<8x128xf32>, vector<128x32xf32>, vector<8x32xf32> -> vector<8x32xf32>
    %c0_16 = arith.constant 0 : index
    %c0_17 = arith.constant 0 : index
    %c0_18 = arith.constant 0 : index
    %c0_19 = arith.constant 0 : index
    %18 = vector.load %arg6[%c0_16, %c0_17, %c0_18, %c0_19] : memref<1x4x1x32xf32, #tpu.memory_space<vmem>>, vector<1x1x1x32xf32>
    %19 = vector.shape_cast %18 : vector<1x1x1x32xf32> to vector<1x32xf32>
    %20 = vector.broadcast %19 : vector<1x32xf32> to vector<8x32xf32>
    %21 = arith.addf %17, %20 : vector<8x32xf32>
    %c0_20 = arith.constant 0 : index
    %c0_21 = arith.constant 0 : index
    %c0_22 = arith.constant 0 : index
    %c0_23 = arith.constant 0 : index
    %22 = vector.load %arg7[%c0_20, %c0_21, %c0_22, %c0_23] : memref<1x4x128x32xf32, #tpu.memory_space<vmem>>, vector<1x1x128x32xf32>
    %23 = vector.shape_cast %22 : vector<1x1x128x32xf32> to vector<128x32xf32>
    %cst_24 = arith.constant dense<0.000000e+00> : vector<8x32xf32>
    %24 = tpu.matmul %3, %23, %cst_24 {dimension_numbers = #tpu.dot_dimension_numbers<[1], [0], [0], [1], [0, 0, 1, 1], [], []>} : vector<8x128xf32>, vector<128x32xf32>, vector<8x32xf32> -> vector<8x32xf32>
    %c0_25 = arith.constant 0 : index
    %c0_26 = arith.constant 0 : index
    %c0_27 = arith.constant 0 : index
    %c0_28 = arith.constant 0 : index
    %25 = vector.load %arg8[%c0_25, %c0_26, %c0_27, %c0_28] : memref<1x4x1x32xf32, #tpu.memory_space<vmem>>, vector<1x1x1x32xf32>
    %26 = vector.shape_cast %25 : vector<1x1x1x32xf32> to vector<1x32xf32>
    %27 = vector.broadcast %26 : vector<1x32xf32> to vector<8x32xf32>
    %28 = arith.addf %24, %27 : vector<8x32xf32>
    %29 = tpu.transpose %21, [1, 0] : vector<8x32xf32> -> vector<32x8xf32>
    %cst_29 = arith.constant dense<0.000000e+00> : vector<8x8xf32>
    %30 = tpu.matmul %14, %29, %cst_29 {dimension_numbers = #tpu.dot_dimension_numbers<[1], [0], [0], [1], [0, 0, 1, 1], [], []>} : vector<8x32xf32>, vector<32x8xf32>, vector<8x8xf32> -> vector<8x8xf32>
    %cst_30 = arith.constant 0xFF800000 : f32
    %31 = vector.broadcast %cst_30 : f32 to vector<8x8xf32>
    %32 = arith.select %6, %30, %31 : vector<8x8xi1>, vector<8x8xf32>
    %cst_31 = arith.constant dense<0xFF800000> : vector<8xf32>
    %33 = vector.multi_reduction <maximumf>, %32, %cst_31 [1] : vector<8x8xf32> to vector<8xf32>
    %34 = vector.shape_cast %33 : vector<8xf32> to vector<8x1xf32>
    %35 = vector.broadcast %34 : vector<8x1xf32> to vector<8x8xf32>
    %36 = arith.subf %32, %35 : vector<8x8xf32>
    %37 = math.exp %36 : vector<8x8xf32>
    %cst_32 = arith.constant dense<0.000000e+00> : vector<8xf32>
    %38 = vector.multi_reduction <add>, %37, %cst_32 [1] : vector<8x8xf32> to vector<8xf32>
    %39 = vector.shape_cast %38 : vector<8xf32> to vector<8x1xf32>
    %40 = tpu.reciprocal %39 {approx = true} : vector<8x1xf32> -> vector<8x1xf32>
    %41 = vector.broadcast %40 : vector<8x1xf32> to vector<8x8xf32>
    %42 = arith.mulf %37, %41 : vector<8x8xf32>
    %cst_33 = arith.constant dense<0.000000e+00> : vector<8x32xf32>
    %43 = tpu.matmul %42, %28, %cst_33 {dimension_numbers = #tpu.dot_dimension_numbers<[1], [0], [0], [1], [0, 0, 1, 1], [], []>} : vector<8x8xf32>, vector<8x32xf32>, vector<8x32xf32> -> vector<8x32xf32>
    %c0_34 = arith.constant 0 : index
    %c0_35 = arith.constant 0 : index
    %c0_36 = arith.constant 0 : index
    %c0_37 = arith.constant 0 : index
    %44 = vector.load %arg9[%c0_34, %c0_35, %c0_36, %c0_37] : memref<1x4x32x128xf32, #tpu.memory_space<vmem>>, vector<1x1x32x128xf32>
    %45 = vector.shape_cast %44 : vector<1x1x32x128xf32> to vector<32x128xf32>
    %cst_38 = arith.constant dense<0.000000e+00> : vector<8x128xf32>
    %46 = tpu.matmul %43, %45, %cst_38 {dimension_numbers = #tpu.dot_dimension_numbers<[1], [0], [0], [1], [0, 0, 1, 1], [], []>} : vector<8x32xf32>, vector<32x128xf32>, vector<8x128xf32> -> vector<8x128xf32>
    %47 = arith.addf %7, %46 : vector<8x128xf32>
    %c0_39 = arith.constant 0 : index
    %c1 = arith.constant 1 : index
    %c0_40 = arith.constant 0 : index
    %c0_41 = arith.constant 0 : index
    %48 = vector.load %arg3[%c0_39, %c1, %c0_40, %c0_41] : memref<1x4x128x32xf32, #tpu.memory_space<vmem>>, vector<1x1x128x32xf32>
    %49 = vector.shape_cast %48 : vector<1x1x128x32xf32> to vector<128x32xf32>
    %cst_42 = arith.constant dense<0.000000e+00> : vector<8x32xf32>
    %50 = tpu.matmul %3, %49, %cst_42 {dimension_numbers = #tpu.dot_dimension_numbers<[1], [0], [0], [1], [0, 0, 1, 1], [], []>} : vector<8x128xf32>, vector<128x32xf32>, vector<8x32xf32> -> vector<8x32xf32>
    %c0_43 = arith.constant 0 : index
    %c1_44 = arith.constant 1 : index
    %c0_45 = arith.constant 0 : index
    %c0_46 = arith.constant 0 : index
    %51 = vector.load %arg4[%c0_43, %c1_44, %c0_45, %c0_46] : memref<1x4x1x32xf32, #tpu.memory_space<vmem>>, vector<1x1x1x32xf32>
    %52 = vector.shape_cast %51 : vector<1x1x1x32xf32> to vector<1x32xf32>
    %53 = vector.broadcast %52 : vector<1x32xf32> to vector<8x32xf32>
    %54 = arith.addf %50, %53 : vector<8x32xf32>
    %c0_47 = arith.constant 0 : index
    %c1_48 = arith.constant 1 : index
    %c0_49 = arith.constant 0 : index
    %c0_50 = arith.constant 0 : index
    %55 = vector.load %arg5[%c0_47, %c1_48, %c0_49, %c0_50] : memref<1x4x128x32xf32, #tpu.memory_space<vmem>>, vector<1x1x128x32xf32>
    %56 = vector.shape_cast %55 : vector<1x1x128x32xf32> to vector<128x32xf32>
    %cst_51 = arith.constant dense<0.000000e+00> : vector<8x32xf32>
    %57 = tpu.matmul %3, %56, %cst_51 {dimension_numbers = #tpu.dot_dimension_numbers<[1], [0], [0], [1], [0, 0, 1, 1], [], []>} : vector<8x128xf32>, vector<128x32xf32>, vector<8x32xf32> -> vector<8x32xf32>
    %c0_52 = arith.constant 0 : index
    %c1_53 = arith.constant 1 : index
    %c0_54 = arith.constant 0 : index
    %c0_55 = arith.constant 0 : index
    %58 = vector.load %arg6[%c0_52, %c1_53, %c0_54, %c0_55] : memref<1x4x1x32xf32, #tpu.memory_space<vmem>>, vector<1x1x1x32xf32>
    %59 = vector.shape_cast %58 : vector<1x1x1x32xf32> to vector<1x32xf32>
    %60 = vector.broadcast %59 : vector<1x32xf32> to vector<8x32xf32>
    %61 = arith.addf %57, %60 : vector<8x32xf32>
    %c0_56 = arith.constant 0 : index
    %c1_57 = arith.constant 1 : index
    %c0_58 = arith.constant 0 : index
    %c0_59 = arith.constant 0 : index
    %62 = vector.load %arg7[%c0_56, %c1_57, %c0_58, %c0_59] : memref<1x4x128x32xf32, #tpu.memory_space<vmem>>, vector<1x1x128x32xf32>
    %63 = vector.shape_cast %62 : vector<1x1x128x32xf32> to vector<128x32xf32>
    %cst_60 = arith.constant dense<0.000000e+00> : vector<8x32xf32>
    %64 = tpu.matmul %3, %63, %cst_60 {dimension_numbers = #tpu.dot_dimension_numbers<[1], [0], [0], [1], [0, 0, 1, 1], [], []>} : vector<8x128xf32>, vector<128x32xf32>, vector<8x32xf32> -> vector<8x32xf32>
    %c0_61 = arith.constant 0 : index
    %c1_62 = arith.constant 1 : index
    %c0_63 = arith.constant 0 : index
    %c0_64 = arith.constant 0 : index
    %65 = vector.load %arg8[%c0_61, %c1_62, %c0_63, %c0_64] : memref<1x4x1x32xf32, #tpu.memory_space<vmem>>, vector<1x1x1x32xf32>
    %66 = vector.shape_cast %65 : vector<1x1x1x32xf32> to vector<1x32xf32>
    %67 = vector.broadcast %66 : vector<1x32xf32> to vector<8x32xf32>
    %68 = arith.addf %64, %67 : vector<8x32xf32>
    %69 = tpu.transpose %61, [1, 0] : vector<8x32xf32> -> vector<32x8xf32>
    %cst_65 = arith.constant dense<0.000000e+00> : vector<8x8xf32>
    %70 = tpu.matmul %54, %69, %cst_65 {dimension_numbers = #tpu.dot_dimension_numbers<[1], [0], [0], [1], [0, 0, 1, 1], [], []>} : vector<8x32xf32>, vector<32x8xf32>, vector<8x8xf32> -> vector<8x8xf32>
    %cst_66 = arith.constant 0xFF800000 : f32
    %71 = vector.broadcast %cst_66 : f32 to vector<8x8xf32>
    %72 = arith.select %6, %70, %71 : vector<8x8xi1>, vector<8x8xf32>
    %cst_67 = arith.constant dense<0xFF800000> : vector<8xf32>
    %73 = vector.multi_reduction <maximumf>, %72, %cst_67 [1] : vector<8x8xf32> to vector<8xf32>
    %74 = vector.shape_cast %73 : vector<8xf32> to vector<8x1xf32>
    %75 = vector.broadcast %74 : vector<8x1xf32> to vector<8x8xf32>
    %76 = arith.subf %72, %75 : vector<8x8xf32>
    %77 = math.exp %76 : vector<8x8xf32>
    %cst_68 = arith.constant dense<0.000000e+00> : vector<8xf32>
    %78 = vector.multi_reduction <add>, %77, %cst_68 [1] : vector<8x8xf32> to vector<8xf32>
    %79 = vector.shape_cast %78 : vector<8xf32> to vector<8x1xf32>
    %80 = tpu.reciprocal %79 {approx = true} : vector<8x1xf32> -> vector<8x1xf32>
    %81 = vector.broadcast %80 : vector<8x1xf32> to vector<8x8xf32>
    %82 = arith.mulf %77, %81 : vector<8x8xf32>
    %cst_69 = arith.constant dense<0.000000e+00> : vector<8x32xf32>
    %83 = tpu.matmul %82, %68, %cst_69 {dimension_numbers = #tpu.dot_dimension_numbers<[1], [0], [0], [1], [0, 0, 1, 1], [], []>} : vector<8x8xf32>, vector<8x32xf32>, vector<8x32xf32> -> vector<8x32xf32>
    %c0_70 = arith.constant 0 : index
    %c1_71 = arith.constant 1 : index
    %c0_72 = arith.constant 0 : index
    %c0_73 = arith.constant 0 : index
    %84 = vector.load %arg9[%c0_70, %c1_71, %c0_72, %c0_73] : memref<1x4x32x128xf32, #tpu.memory_space<vmem>>, vector<1x1x32x128xf32>
    %85 = vector.shape_cast %84 : vector<1x1x32x128xf32> to vector<32x128xf32>
    %cst_74 = arith.constant dense<0.000000e+00> : vector<8x128xf32>
    %86 = tpu.matmul %83, %85, %cst_74 {dimension_numbers = #tpu.dot_dimension_numbers<[1], [0], [0], [1], [0, 0, 1, 1], [], []>} : vector<8x32xf32>, vector<32x128xf32>, vector<8x128xf32> -> vector<8x128xf32>
    %87 = arith.addf %47, %86 : vector<8x128xf32>
    %c0_75 = arith.constant 0 : index
    %c2 = arith.constant 2 : index
    %c0_76 = arith.constant 0 : index
    %c0_77 = arith.constant 0 : index
    %88 = vector.load %arg3[%c0_75, %c2, %c0_76, %c0_77] : memref<1x4x128x32xf32, #tpu.memory_space<vmem>>, vector<1x1x128x32xf32>
    %89 = vector.shape_cast %88 : vector<1x1x128x32xf32> to vector<128x32xf32>
    %cst_78 = arith.constant dense<0.000000e+00> : vector<8x32xf32>
    %90 = tpu.matmul %3, %89, %cst_78 {dimension_numbers = #tpu.dot_dimension_numbers<[1], [0], [0], [1], [0, 0, 1, 1], [], []>} : vector<8x128xf32>, vector<128x32xf32>, vector<8x32xf32> -> vector<8x32xf32>
    %c0_79 = arith.constant 0 : index
    %c2_80 = arith.constant 2 : index
    %c0_81 = arith.constant 0 : index
    %c0_82 = arith.constant 0 : index
    %91 = vector.load %arg4[%c0_79, %c2_80, %c0_81, %c0_82] : memref<1x4x1x32xf32, #tpu.memory_space<vmem>>, vector<1x1x1x32xf32>
    %92 = vector.shape_cast %91 : vector<1x1x1x32xf32> to vector<1x32xf32>
    %93 = vector.broadcast %92 : vector<1x32xf32> to vector<8x32xf32>
    %94 = arith.addf %90, %93 : vector<8x32xf32>
    %c0_83 = arith.constant 0 : index
    %c2_84 = arith.constant 2 : index
    %c0_85 = arith.constant 0 : index
    %c0_86 = arith.constant 0 : index
    %95 = vector.load %arg5[%c0_83, %c2_84, %c0_85, %c0_86] : memref<1x4x128x32xf32, #tpu.memory_space<vmem>>, vector<1x1x128x32xf32>
    %96 = vector.shape_cast %95 : vector<1x1x128x32xf32> to vector<128x32xf32>
    %cst_87 = arith.constant dense<0.000000e+00> : vector<8x32xf32>
    %97 = tpu.matmul %3, %96, %cst_87 {dimension_numbers = #tpu.dot_dimension_numbers<[1], [0], [0], [1], [0, 0, 1, 1], [], []>} : vector<8x128xf32>, vector<128x32xf32>, vector<8x32xf32> -> vector<8x32xf32>
    %c0_88 = arith.constant 0 : index
    %c2_89 = arith.constant 2 : index
    %c0_90 = arith.constant 0 : index
    %c0_91 = arith.constant 0 : index
    %98 = vector.load %arg6[%c0_88, %c2_89, %c0_90, %c0_91] : memref<1x4x1x32xf32, #tpu.memory_space<vmem>>, vector<1x1x1x32xf32>
    %99 = vector.shape_cast %98 : vector<1x1x1x32xf32> to vector<1x32xf32>
    %100 = vector.broadcast %99 : vector<1x32xf32> to vector<8x32xf32>
    %101 = arith.addf %97, %100 : vector<8x32xf32>
    %c0_92 = arith.constant 0 : index
    %c2_93 = arith.constant 2 : index
    %c0_94 = arith.constant 0 : index
    %c0_95 = arith.constant 0 : index
    %102 = vector.load %arg7[%c0_92, %c2_93, %c0_94, %c0_95] : memref<1x4x128x32xf32, #tpu.memory_space<vmem>>, vector<1x1x128x32xf32>
    %103 = vector.shape_cast %102 : vector<1x1x128x32xf32> to vector<128x32xf32>
    %cst_96 = arith.constant dense<0.000000e+00> : vector<8x32xf32>
    %104 = tpu.matmul %3, %103, %cst_96 {dimension_numbers = #tpu.dot_dimension_numbers<[1], [0], [0], [1], [0, 0, 1, 1], [], []>} : vector<8x128xf32>, vector<128x32xf32>, vector<8x32xf32> -> vector<8x32xf32>
    %c0_97 = arith.constant 0 : index
    %c2_98 = arith.constant 2 : index
    %c0_99 = arith.constant 0 : index
    %c0_100 = arith.constant 0 : index
    %105 = vector.load %arg8[%c0_97, %c2_98, %c0_99, %c0_100] : memref<1x4x1x32xf32, #tpu.memory_space<vmem>>, vector<1x1x1x32xf32>
    %106 = vector.shape_cast %105 : vector<1x1x1x32xf32> to vector<1x32xf32>
    %107 = vector.broadcast %106 : vector<1x32xf32> to vector<8x32xf32>
    %108 = arith.addf %104, %107 : vector<8x32xf32>
    %109 = tpu.transpose %101, [1, 0] : vector<8x32xf32> -> vector<32x8xf32>
    %cst_101 = arith.constant dense<0.000000e+00> : vector<8x8xf32>
    %110 = tpu.matmul %94, %109, %cst_101 {dimension_numbers = #tpu.dot_dimension_numbers<[1], [0], [0], [1], [0, 0, 1, 1], [], []>} : vector<8x32xf32>, vector<32x8xf32>, vector<8x8xf32> -> vector<8x8xf32>
    %cst_102 = arith.constant 0xFF800000 : f32
    %111 = vector.broadcast %cst_102 : f32 to vector<8x8xf32>
    %112 = arith.select %6, %110, %111 : vector<8x8xi1>, vector<8x8xf32>
    %cst_103 = arith.constant dense<0xFF800000> : vector<8xf32>
    %113 = vector.multi_reduction <maximumf>, %112, %cst_103 [1] : vector<8x8xf32> to vector<8xf32>
    %114 = vector.shape_cast %113 : vector<8xf32> to vector<8x1xf32>
    %115 = vector.broadcast %114 : vector<8x1xf32> to vector<8x8xf32>
    %116 = arith.subf %112, %115 : vector<8x8xf32>
    %117 = math.exp %116 : vector<8x8xf32>
    %cst_104 = arith.constant dense<0.000000e+00> : vector<8xf32>
    %118 = vector.multi_reduction <add>, %117, %cst_104 [1] : vector<8x8xf32> to vector<8xf32>
    %119 = vector.shape_cast %118 : vector<8xf32> to vector<8x1xf32>
    %120 = tpu.reciprocal %119 {approx = true} : vector<8x1xf32> -> vector<8x1xf32>
    %121 = vector.broadcast %120 : vector<8x1xf32> to vector<8x8xf32>
    %122 = arith.mulf %117, %121 : vector<8x8xf32>
    %cst_105 = arith.constant dense<0.000000e+00> : vector<8x32xf32>
    %123 = tpu.matmul %122, %108, %cst_105 {dimension_numbers = #tpu.dot_dimension_numbers<[1], [0], [0], [1], [0, 0, 1, 1], [], []>} : vector<8x8xf32>, vector<8x32xf32>, vector<8x32xf32> -> vector<8x32xf32>
    %c0_106 = arith.constant 0 : index
    %c2_107 = arith.constant 2 : index
    %c0_108 = arith.constant 0 : index
    %c0_109 = arith.constant 0 : index
    %124 = vector.load %arg9[%c0_106, %c2_107, %c0_108, %c0_109] : memref<1x4x32x128xf32, #tpu.memory_space<vmem>>, vector<1x1x32x128xf32>
    %125 = vector.shape_cast %124 : vector<1x1x32x128xf32> to vector<32x128xf32>
    %cst_110 = arith.constant dense<0.000000e+00> : vector<8x128xf32>
    %126 = tpu.matmul %123, %125, %cst_110 {dimension_numbers = #tpu.dot_dimension_numbers<[1], [0], [0], [1], [0, 0, 1, 1], [], []>} : vector<8x32xf32>, vector<32x128xf32>, vector<8x128xf32> -> vector<8x128xf32>
    %127 = arith.addf %87, %126 : vector<8x128xf32>
    %c0_111 = arith.constant 0 : index
    %c3 = arith.constant 3 : index
    %c0_112 = arith.constant 0 : index
    %c0_113 = arith.constant 0 : index
    %128 = vector.load %arg3[%c0_111, %c3, %c0_112, %c0_113] : memref<1x4x128x32xf32, #tpu.memory_space<vmem>>, vector<1x1x128x32xf32>
    %129 = vector.shape_cast %128 : vector<1x1x128x32xf32> to vector<128x32xf32>
    %cst_114 = arith.constant dense<0.000000e+00> : vector<8x32xf32>
    %130 = tpu.matmul %3, %129, %cst_114 {dimension_numbers = #tpu.dot_dimension_numbers<[1], [0], [0], [1], [0, 0, 1, 1], [], []>} : vector<8x128xf32>, vector<128x32xf32>, vector<8x32xf32> -> vector<8x32xf32>
    %c0_115 = arith.constant 0 : index
    %c3_116 = arith.constant 3 : index
    %c0_117 = arith.constant 0 : index
    %c0_118 = arith.constant 0 : index
    %131 = vector.load %arg4[%c0_115, %c3_116, %c0_117, %c0_118] : memref<1x4x1x32xf32, #tpu.memory_space<vmem>>, vector<1x1x1x32xf32>
    %132 = vector.shape_cast %131 : vector<1x1x1x32xf32> to vector<1x32xf32>
    %133 = vector.broadcast %132 : vector<1x32xf32> to vector<8x32xf32>
    %134 = arith.addf %130, %133 : vector<8x32xf32>
    %c0_119 = arith.constant 0 : index
    %c3_120 = arith.constant 3 : index
    %c0_121 = arith.constant 0 : index
    %c0_122 = arith.constant 0 : index
    %135 = vector.load %arg5[%c0_119, %c3_120, %c0_121, %c0_122] : memref<1x4x128x32xf32, #tpu.memory_space<vmem>>, vector<1x1x128x32xf32>
    %136 = vector.shape_cast %135 : vector<1x1x128x32xf32> to vector<128x32xf32>
    %cst_123 = arith.constant dense<0.000000e+00> : vector<8x32xf32>
    %137 = tpu.matmul %3, %136, %cst_123 {dimension_numbers = #tpu.dot_dimension_numbers<[1], [0], [0], [1], [0, 0, 1, 1], [], []>} : vector<8x128xf32>, vector<128x32xf32>, vector<8x32xf32> -> vector<8x32xf32>
    %c0_124 = arith.constant 0 : index
    %c3_125 = arith.constant 3 : index
    %c0_126 = arith.constant 0 : index
    %c0_127 = arith.constant 0 : index
    %138 = vector.load %arg6[%c0_124, %c3_125, %c0_126, %c0_127] : memref<1x4x1x32xf32, #tpu.memory_space<vmem>>, vector<1x1x1x32xf32>
    %139 = vector.shape_cast %138 : vector<1x1x1x32xf32> to vector<1x32xf32>
    %140 = vector.broadcast %139 : vector<1x32xf32> to vector<8x32xf32>
    %141 = arith.addf %137, %140 : vector<8x32xf32>
    %c0_128 = arith.constant 0 : index
    %c3_129 = arith.constant 3 : index
    %c0_130 = arith.constant 0 : index
    %c0_131 = arith.constant 0 : index
    %142 = vector.load %arg7[%c0_128, %c3_129, %c0_130, %c0_131] : memref<1x4x128x32xf32, #tpu.memory_space<vmem>>, vector<1x1x128x32xf32>
    %143 = vector.shape_cast %142 : vector<1x1x128x32xf32> to vector<128x32xf32>
    %cst_132 = arith.constant dense<0.000000e+00> : vector<8x32xf32>
    %144 = tpu.matmul %3, %143, %cst_132 {dimension_numbers = #tpu.dot_dimension_numbers<[1], [0], [0], [1], [0, 0, 1, 1], [], []>} : vector<8x128xf32>, vector<128x32xf32>, vector<8x32xf32> -> vector<8x32xf32>
    %c0_133 = arith.constant 0 : index
    %c3_134 = arith.constant 3 : index
    %c0_135 = arith.constant 0 : index
    %c0_136 = arith.constant 0 : index
    %145 = vector.load %arg8[%c0_133, %c3_134, %c0_135, %c0_136] : memref<1x4x1x32xf32, #tpu.memory_space<vmem>>, vector<1x1x1x32xf32>
    %146 = vector.shape_cast %145 : vector<1x1x1x32xf32> to vector<1x32xf32>
    %147 = vector.broadcast %146 : vector<1x32xf32> to vector<8x32xf32>
    %148 = arith.addf %144, %147 : vector<8x32xf32>
    %149 = tpu.transpose %141, [1, 0] : vector<8x32xf32> -> vector<32x8xf32>
    %cst_137 = arith.constant dense<0.000000e+00> : vector<8x8xf32>
    %150 = tpu.matmul %134, %149, %cst_137 {dimension_numbers = #tpu.dot_dimension_numbers<[1], [0], [0], [1], [0, 0, 1, 1], [], []>} : vector<8x32xf32>, vector<32x8xf32>, vector<8x8xf32> -> vector<8x8xf32>
    %cst_138 = arith.constant 0xFF800000 : f32
    %151 = vector.broadcast %cst_138 : f32 to vector<8x8xf32>
    %152 = arith.select %6, %150, %151 : vector<8x8xi1>, vector<8x8xf32>
    %cst_139 = arith.constant dense<0xFF800000> : vector<8xf32>
    %153 = vector.multi_reduction <maximumf>, %152, %cst_139 [1] : vector<8x8xf32> to vector<8xf32>
    %154 = vector.shape_cast %153 : vector<8xf32> to vector<8x1xf32>
    %155 = vector.broadcast %154 : vector<8x1xf32> to vector<8x8xf32>
    %156 = arith.subf %152, %155 : vector<8x8xf32>
    %157 = math.exp %156 : vector<8x8xf32>
    %cst_140 = arith.constant dense<0.000000e+00> : vector<8xf32>
    %158 = vector.multi_reduction <add>, %157, %cst_140 [1] : vector<8x8xf32> to vector<8xf32>
    %159 = vector.shape_cast %158 : vector<8xf32> to vector<8x1xf32>
    %160 = tpu.reciprocal %159 {approx = true} : vector<8x1xf32> -> vector<8x1xf32>
    %161 = vector.broadcast %160 : vector<8x1xf32> to vector<8x8xf32>
    %162 = arith.mulf %157, %161 : vector<8x8xf32>
    %cst_141 = arith.constant dense<0.000000e+00> : vector<8x32xf32>
    %163 = tpu.matmul %162, %148, %cst_141 {dimension_numbers = #tpu.dot_dimension_numbers<[1], [0], [0], [1], [0, 0, 1, 1], [], []>} : vector<8x8xf32>, vector<8x32xf32>, vector<8x32xf32> -> vector<8x32xf32>
    %c0_142 = arith.constant 0 : index
    %c3_143 = arith.constant 3 : index
    %c0_144 = arith.constant 0 : index
    %c0_145 = arith.constant 0 : index
    %164 = vector.load %arg9[%c0_142, %c3_143, %c0_144, %c0_145] : memref<1x4x32x128xf32, #tpu.memory_space<vmem>>, vector<1x1x32x128xf32>
    %165 = vector.shape_cast %164 : vector<1x1x32x128xf32> to vector<32x128xf32>
    %cst_146 = arith.constant dense<0.000000e+00> : vector<8x128xf32>
    %166 = tpu.matmul %163, %165, %cst_146 {dimension_numbers = #tpu.dot_dimension_numbers<[1], [0], [0], [1], [0, 0, 1, 1], [], []>} : vector<8x32xf32>, vector<32x128xf32>, vector<8x128xf32> -> vector<8x128xf32>
    %167 = arith.addf %127, %166 : vector<8x128xf32>
    %c0_147 = arith.constant 0 : index
    %c0_148 = arith.constant 0 : index
    %c0_149 = arith.constant 0 : index
    %168 = vector.load %arg10[%c0_147, %c0_148, %c0_149] : memref<1x1x128xf32, #tpu.memory_space<vmem>>, vector<1x1x128xf32>
    %169 = vector.shape_cast %168 : vector<1x1x128xf32> to vector<1x128xf32>
    %170 = vector.broadcast %169 : vector<1x128xf32> to vector<8x128xf32>
    %171 = arith.addf %167, %170 : vector<8x128xf32>
    %cst_150 = arith.constant 0.000000e+00 : f32
    %172 = vector.broadcast %cst_150 : f32 to vector<8x128xf32>
    %173 = arith.maximumf %171, %172 : vector<8x128xf32>
    %c0_151 = arith.constant 0 : index
    %c0_152 = arith.constant 0 : index
    %c0_153 = arith.constant 0 : index
    %174 = vector.load %arg11[%c0_151, %c0_152, %c0_153] : memref<1x128x128xf32, #tpu.memory_space<vmem>>, vector<1x128x128xf32>
    %175 = vector.shape_cast %174 : vector<1x128x128xf32> to vector<128x128xf32>
    %cst_154 = arith.constant dense<0.000000e+00> : vector<8x128xf32>
    %176 = tpu.matmul %173, %175, %cst_154 {dimension_numbers = #tpu.dot_dimension_numbers<[1], [0], [0], [1], [0, 0, 1, 1], [], []>} : vector<8x128xf32>, vector<128x128xf32>, vector<8x128xf32> -> vector<8x128xf32>
    %c0_155 = arith.constant 0 : index
    %c0_156 = arith.constant 0 : index
    %c0_157 = arith.constant 0 : index
    %177 = vector.load %arg12[%c0_155, %c0_156, %c0_157] : memref<1x1x128xf32, #tpu.memory_space<vmem>>, vector<1x1x128xf32>
    %178 = vector.shape_cast %177 : vector<1x1x128xf32> to vector<1x128xf32>
    %179 = vector.broadcast %178 : vector<1x128xf32> to vector<8x128xf32>
    %180 = arith.addf %176, %179 : vector<8x128xf32>
    %181 = arith.addf %180, %3 : vector<8x128xf32>
    %c0_158 = arith.constant 0 : index
    %c0_159 = arith.constant 0 : index
    %c0_160 = arith.constant 0 : index
    %182 = vector.load %arg13[%c0_158, %c0_159, %c0_160] : memref<1x1x128xf32, #tpu.memory_space<vmem>>, vector<1x1x128xf32>
    %183 = vector.shape_cast %182 : vector<1x1x128xf32> to vector<1x128xf32>
    %c0_161 = arith.constant 0 : index
    %c0_162 = arith.constant 0 : index
    %c0_163 = arith.constant 0 : index
    %184 = vector.load %arg14[%c0_161, %c0_162, %c0_163] : memref<1x1x128xf32, #tpu.memory_space<vmem>>, vector<1x1x128xf32>
    %185 = vector.shape_cast %184 : vector<1x1x128xf32> to vector<1x128xf32>
    %cst_164 = arith.constant dense<0.000000e+00> : vector<8xf32>
    %186 = vector.multi_reduction <add>, %181, %cst_164 [1] : vector<8x128xf32> to vector<8xf32>
    %187 = vector.shape_cast %186 : vector<8xf32> to vector<8x1xf32>
    %cst_165 = arith.constant 1.280000e+02 : f32
    %188 = vector.broadcast %cst_165 : f32 to vector<8x1xf32>
    %189 = arith.divf %187, %188 : vector<8x1xf32>
    %190 = vector.broadcast %189 : vector<8x1xf32> to vector<8x128xf32>
    %191 = arith.subf %181, %190 : vector<8x128xf32>
    %192 = arith.mulf %191, %191 : vector<8x128xf32>
    %cst_166 = arith.constant dense<0.000000e+00> : vector<8xf32>
    %193 = vector.multi_reduction <add>, %192, %cst_166 [1] : vector<8x128xf32> to vector<8xf32>
    %194 = vector.shape_cast %193 : vector<8xf32> to vector<8x1xf32>
    %cst_167 = arith.constant 1.280000e+02 : f32
    %195 = vector.broadcast %cst_167 : f32 to vector<8x1xf32>
    %196 = arith.divf %194, %195 : vector<8x1xf32>
    %cst_168 = arith.constant 9.99999974E-6 : f32
    %197 = vector.broadcast %cst_168 : f32 to vector<8x1xf32>
    %198 = arith.addf %196, %197 : vector<8x1xf32>
    %199 = math.rsqrt %198 : vector<8x1xf32>
    %200 = vector.broadcast %199 : vector<8x1xf32> to vector<8x128xf32>
    %201 = arith.mulf %191, %200 : vector<8x128xf32>
    %202 = vector.broadcast %183 : vector<1x128xf32> to vector<8x128xf32>
    %203 = arith.mulf %201, %202 : vector<8x128xf32>
    %204 = vector.broadcast %185 : vector<1x128xf32> to vector<8x128xf32>
    %205 = arith.addf %203, %204 : vector<8x128xf32>
    %c0_169 = arith.constant 0 : index
    %c0_170 = arith.constant 0 : index
    %c0_171 = arith.constant 0 : index
    %206 = vector.load %arg15[%c0_169, %c0_170, %c0_171] : memref<1x128x128xf32, #tpu.memory_space<vmem>>, vector<1x128x128xf32>
    %207 = vector.shape_cast %206 : vector<1x128x128xf32> to vector<128x128xf32>
    %cst_172 = arith.constant dense<0.000000e+00> : vector<8x128xf32>
    %208 = tpu.matmul %205, %207, %cst_172 {dimension_numbers = #tpu.dot_dimension_numbers<[1], [0], [0], [1], [0, 0, 1, 1], [], []>} : vector<8x128xf32>, vector<128x128xf32>, vector<8x128xf32> -> vector<8x128xf32>
    %c0_173 = arith.constant 0 : index
    %c0_174 = arith.constant 0 : index
    %c0_175 = arith.constant 0 : index
    %209 = vector.load %arg16[%c0_173, %c0_174, %c0_175] : memref<1x1x128xf32, #tpu.memory_space<vmem>>, vector<1x1x128xf32>
    %210 = vector.shape_cast %209 : vector<1x1x128xf32> to vector<1x128xf32>
    %211 = vector.broadcast %210 : vector<1x128xf32> to vector<8x128xf32>
    %212 = arith.addf %208, %211 : vector<8x128xf32>
    %cst_176 = arith.constant 0.000000e+00 : f32
    %213 = vector.broadcast %cst_176 : f32 to vector<8x128xf32>
    %214 = arith.maximumf %212, %213 : vector<8x128xf32>
    %c0_177 = arith.constant 0 : index
    %c0_178 = arith.constant 0 : index
    %c0_179 = arith.constant 0 : index
    %215 = vector.load %arg17[%c0_177, %c0_178, %c0_179] : memref<1x128x128xf32, #tpu.memory_space<vmem>>, vector<1x128x128xf32>
    %216 = vector.shape_cast %215 : vector<1x128x128xf32> to vector<128x128xf32>
    %cst_180 = arith.constant dense<0.000000e+00> : vector<8x128xf32>
    %217 = tpu.matmul %214, %216, %cst_180 {dimension_numbers = #tpu.dot_dimension_numbers<[1], [0], [0], [1], [0, 0, 1, 1], [], []>} : vector<8x128xf32>, vector<128x128xf32>, vector<8x128xf32> -> vector<8x128xf32>
    %c0_181 = arith.constant 0 : index
    %c0_182 = arith.constant 0 : index
    %c0_183 = arith.constant 0 : index
    %218 = vector.load %arg18[%c0_181, %c0_182, %c0_183] : memref<1x1x128xf32, #tpu.memory_space<vmem>>, vector<1x1x128xf32>
    %219 = vector.shape_cast %218 : vector<1x1x128xf32> to vector<1x128xf32>
    %220 = vector.broadcast %219 : vector<1x128xf32> to vector<8x128xf32>
    %221 = arith.addf %217, %220 : vector<8x128xf32>
    %222 = arith.addf %205, %221 : vector<8x128xf32>
    %c0_184 = arith.constant 0 : index
    %c0_185 = arith.constant 0 : index
    %c0_186 = arith.constant 0 : index
    %223 = vector.load %arg19[%c0_184, %c0_185, %c0_186] : memref<1x1x128xf32, #tpu.memory_space<vmem>>, vector<1x1x128xf32>
    %224 = vector.shape_cast %223 : vector<1x1x128xf32> to vector<1x128xf32>
    %c0_187 = arith.constant 0 : index
    %c0_188 = arith.constant 0 : index
    %c0_189 = arith.constant 0 : index
    %225 = vector.load %arg20[%c0_187, %c0_188, %c0_189] : memref<1x1x128xf32, #tpu.memory_space<vmem>>, vector<1x1x128xf32>
    %226 = vector.shape_cast %225 : vector<1x1x128xf32> to vector<1x128xf32>
    %cst_190 = arith.constant dense<0.000000e+00> : vector<8xf32>
    %227 = vector.multi_reduction <add>, %222, %cst_190 [1] : vector<8x128xf32> to vector<8xf32>
    %228 = vector.shape_cast %227 : vector<8xf32> to vector<8x1xf32>
    %cst_191 = arith.constant 1.280000e+02 : f32
    %229 = vector.broadcast %cst_191 : f32 to vector<8x1xf32>
    %230 = arith.divf %228, %229 : vector<8x1xf32>
    %231 = vector.broadcast %230 : vector<8x1xf32> to vector<8x128xf32>
    %232 = arith.subf %222, %231 : vector<8x128xf32>
    %233 = arith.mulf %232, %232 : vector<8x128xf32>
    %cst_192 = arith.constant dense<0.000000e+00> : vector<8xf32>
    %234 = vector.multi_reduction <add>, %233, %cst_192 [1] : vector<8x128xf32> to vector<8xf32>
    %235 = vector.shape_cast %234 : vector<8xf32> to vector<8x1xf32>
    %cst_193 = arith.constant 1.280000e+02 : f32
    %236 = vector.broadcast %cst_193 : f32 to vector<8x1xf32>
    %237 = arith.divf %235, %236 : vector<8x1xf32>
    %cst_194 = arith.constant 9.99999974E-6 : f32
    %238 = vector.broadcast %cst_194 : f32 to vector<8x1xf32>
    %239 = arith.addf %237, %238 : vector<8x1xf32>
    %240 = math.rsqrt %239 : vector<8x1xf32>
    %241 = vector.broadcast %240 : vector<8x1xf32> to vector<8x128xf32>
    %242 = arith.mulf %232, %241 : vector<8x128xf32>
    %243 = vector.broadcast %224 : vector<1x128xf32> to vector<8x128xf32>
    %244 = arith.mulf %242, %243 : vector<8x128xf32>
    %245 = vector.broadcast %226 : vector<1x128xf32> to vector<8x128xf32>
    %246 = arith.addf %244, %245 : vector<8x128xf32>
    %c0_195 = arith.constant 0 : index
    %c0_196 = arith.constant 0 : index
    %247 = vector.load %arg24[%c0_195, %c0_196] : memref<8x128xf32, #tpu.memory_space<vmem>>, vector<8x128xf32>
    tpu.vector_store %arg24[%c0_195, %c0_196], %246 {strides = array<i32>} : memref<8x128xf32, #tpu.memory_space<vmem>>, vector<8x128xf32>,
    %c3_i32 = arith.constant 3 : i32
    %248 = arith.cmpi eq, %arg1, %c3_i32 : i32
    %249 = arith.extui %248 : i1 to i32
    %c0_i32_197 = arith.constant 0 : i32
    %250 = arith.cmpi ne, %249, %c0_i32_197 : i32
    scf.if %250 {
      %c0_198 = arith.constant 0 : index
      %c0_199 = arith.constant 0 : index
      %251 = vector.load %arg21[%c0_198, %c0_199] : memref<128x128xf32, #tpu.memory_space<vmem>>, vector<128x128xf32>
      %cst_200 = arith.constant dense<0.000000e+00> : vector<8x128xf32>
      %252 = tpu.matmul %246, %251, %cst_200 {dimension_numbers = #tpu.dot_dimension_numbers<[1], [0], [0], [1], [0, 0, 1, 1], [], []>} : vector<8x128xf32>, vector<128x128xf32>, vector<8x128xf32> -> vector<8x128xf32>
      %c0_201 = arith.constant 0 : index
      %c0_202 = arith.constant 0 : index
      %253 = vector.load %arg22[%c0_201, %c0_202] : memref<1x128xf32, #tpu.memory_space<vmem>>, vector<1x128xf32>
      %254 = vector.broadcast %253 : vector<1x128xf32> to vector<8x128xf32>
      %255 = arith.addf %252, %254 : vector<8x128xf32>
      %c0_203 = arith.constant 0 : index
      %c0_204 = arith.constant 0 : index
      %256 = vector.load %arg23[%c0_203, %c0_204] : memref<8x128xf32, #tpu.memory_space<vmem>>, vector<8x128xf32>
      tpu.vector_store %arg23[%c0_203, %c0_204], %255 {strides = array<i32>} : memref<8x128xf32, #tpu.memory_space<vmem>>, vector<8x128xf32>,
    } else {
    }
    return
  }
  func.func @transform_0(%arg0: i32, %arg1: i32) -> (i32, i32) {
    %c0_i32 = arith.constant 0 : i32
    %c0_i32_0 = arith.constant 0 : i32
    return %arg0, %c0_i32 : i32, i32
  }
  func.func @transform_1(%arg0: i32, %arg1: i32) -> (i32, i32, i32, i32) {
    %c0_i32 = arith.constant 0 : i32
    %c0_i32_0 = arith.constant 0 : i32
    %c0_i32_1 = arith.constant 0 : i32
    %c0_i32_2 = arith.constant 0 : i32
    return %arg1, %c0_i32, %c0_i32_0, %c0_i32_1 : i32, i32, i32, i32
  }
  func.func @transform_2(%arg0: i32, %arg1: i32) -> (i32, i32, i32, i32) {
    %c0_i32 = arith.constant 0 : i32
    %c0_i32_0 = arith.constant 0 : i32
    %c0_i32_1 = arith.constant 0 : i32
    %c0_i32_2 = arith.constant 0 : i32
    return %arg1, %c0_i32, %c0_i32_0, %c0_i32_1 : i32, i32, i32, i32
  }
  func.func @transform_3(%arg0: i32, %arg1: i32) -> (i32, i32, i32, i32) {
    %c0_i32 = arith.constant 0 : i32
    %c0_i32_0 = arith.constant 0 : i32
    %c0_i32_1 = arith.constant 0 : i32
    %c0_i32_2 = arith.constant 0 : i32
    return %arg1, %c0_i32, %c0_i32_0, %c0_i32_1 : i32, i32, i32, i32
  }
  func.func @transform_4(%arg0: i32, %arg1: i32) -> (i32, i32, i32, i32) {
    %c0_i32 = arith.constant 0 : i32
    %c0_i32_0 = arith.constant 0 : i32
    %c0_i32_1 = arith.constant 0 : i32
    %c0_i32_2 = arith.constant 0 : i32
    return %arg1, %c0_i32, %c0_i32_0, %c0_i32_1 : i32, i32, i32, i32
  }
  func.func @transform_5(%arg0: i32, %arg1: i32) -> (i32, i32, i32, i32) {
    %c0_i32 = arith.constant 0 : i32
    %c0_i32_0 = arith.constant 0 : i32
    %c0_i32_1 = arith.constant 0 : i32
    %c0_i32_2 = arith.constant 0 : i32
    return %arg1, %c0_i32, %c0_i32_0, %c0_i32_1 : i32, i32, i32, i32
  }
  func.func @transform_6(%arg0: i32, %arg1: i32) -> (i32, i32, i32, i32) {
    %c0_i32 = arith.constant 0 : i32
    %c0_i32_0 = arith.constant 0 : i32
    %c0_i32_1 = arith.constant 0 : i32
    %c0_i32_2 = arith.constant 0 : i32
    return %arg1, %c0_i32, %c0_i32_0, %c0_i32_1 : i32, i32, i32, i32
  }
  func.func @transform_7(%arg0: i32, %arg1: i32) -> (i32, i32, i32, i32) {
    %c0_i32 = arith.constant 0 : i32
    %c0_i32_0 = arith.constant 0 : i32
    %c0_i32_1 = arith.constant 0 : i32
    %c0_i32_2 = arith.constant 0 : i32
    return %arg1, %c0_i32, %c0_i32_0, %c0_i32_1 : i32, i32, i32, i32
  }
  func.func @transform_8(%arg0: i32, %arg1: i32) -> (i32, i32, i32) {
    %c0_i32 = arith.constant 0 : i32
    %c0_i32_0 = arith.constant 0 : i32
    %c0_i32_1 = arith.constant 0 : i32
    return %arg1, %c0_i32, %c0_i32_0 : i32, i32, i32
  }
  func.func @transform_9(%arg0: i32, %arg1: i32) -> (i32, i32, i32) {
    %c0_i32 = arith.constant 0 : i32
    %c0_i32_0 = arith.constant 0 : i32
    %c0_i32_1 = arith.constant 0 : i32
    return %arg1, %c0_i32, %c0_i32_0 : i32, i32, i32
  }
  func.func @transform_10(%arg0: i32, %arg1: i32) -> (i32, i32, i32) {
    %c0_i32 = arith.constant 0 : i32
    %c0_i32_0 = arith.constant 0 : i32
    %c0_i32_1 = arith.constant 0 : i32
    return %arg1, %c0_i32, %c0_i32_0 : i32, i32, i32
  }
  func.func @transform_11(%arg0: i32, %arg1: i32) -> (i32, i32, i32) {
    %c0_i32 = arith.constant 0 : i32
    %c0_i32_0 = arith.constant 0 : i32
    %c0_i32_1 = arith.constant 0 : i32
    return %arg1, %c0_i32, %c0_i32_0 : i32, i32, i32
  }
  func.func @transform_12(%arg0: i32, %arg1: i32) -> (i32, i32, i32) {
    %c0_i32 = arith.constant 0 : i32
    %c0_i32_0 = arith.constant 0 : i32
    %c0_i32_1 = arith.constant 0 : i32
    return %arg1, %c0_i32, %c0_i32_0 : i32, i32, i32
  }
  func.func @transform_13(%arg0: i32, %arg1: i32) -> (i32, i32, i32) {
    %c0_i32 = arith.constant 0 : i32
    %c0_i32_0 = arith.constant 0 : i32
    %c0_i32_1 = arith.constant 0 : i32
    return %arg1, %c0_i32, %c0_i32_0 : i32, i32, i32
  }
  func.func @transform_14(%arg0: i32, %arg1: i32) -> (i32, i32, i32) {
    %c0_i32 = arith.constant 0 : i32
    %c0_i32_0 = arith.constant 0 : i32
    %c0_i32_1 = arith.constant 0 : i32
    return %arg1, %c0_i32, %c0_i32_0 : i32, i32, i32
  }
  func.func @transform_15(%arg0: i32, %arg1: i32) -> (i32, i32, i32) {
    %c0_i32 = arith.constant 0 : i32
    %c0_i32_0 = arith.constant 0 : i32
    %c0_i32_1 = arith.constant 0 : i32
    return %arg1, %c0_i32, %c0_i32_0 : i32, i32, i32
  }
  func.func @transform_16(%arg0: i32, %arg1: i32) -> (i32, i32, i32) {
    %c0_i32 = arith.constant 0 : i32
    %c0_i32_0 = arith.constant 0 : i32
    %c0_i32_1 = arith.constant 0 : i32
    return %arg1, %c0_i32, %c0_i32_0 : i32, i32, i32
  }
  func.func @transform_17(%arg0: i32, %arg1: i32) -> (i32, i32, i32) {
    %c0_i32 = arith.constant 0 : i32
    %c0_i32_0 = arith.constant 0 : i32
    %c0_i32_1 = arith.constant 0 : i32
    return %arg1, %c0_i32, %c0_i32_0 : i32, i32, i32
  }
  func.func @transform_18(%arg0: i32, %arg1: i32) -> (i32, i32, i32) {
    %c0_i32 = arith.constant 0 : i32
    %c0_i32_0 = arith.constant 0 : i32
    %c0_i32_1 = arith.constant 0 : i32
    return %arg1, %c0_i32, %c0_i32_0 : i32, i32, i32
  }
  func.func @transform_19(%arg0: i32, %arg1: i32) -> (i32, i32) {
    %c0_i32 = arith.constant 0 : i32
    %c0_i32_0 = arith.constant 0 : i32
    %c0_i32_1 = arith.constant 0 : i32
    return %c0_i32, %c0_i32_0 : i32, i32
  }
  func.func @transform_20(%arg0: i32, %arg1: i32) -> (i32, i32) {
    %c0_i32 = arith.constant 0 : i32
    %c0_i32_0 = arith.constant 0 : i32
    %c0_i32_1 = arith.constant 0 : i32
    return %c0_i32, %c0_i32_0 : i32, i32
  }
  func.func @transform_21(%arg0: i32, %arg1: i32) -> (i32, i32) {
    %c0_i32 = arith.constant 0 : i32
    %c0_i32_0 = arith.constant 0 : i32
    return %arg0, %c0_i32 : i32, i32
  }
}

</mosaic_0001>

<bundles_post_ra>
// kernel: lm_pallas_forward.1
= control target key start
LH: loop header
LB: loop body
LE: loop exit
PB: predicated region body
PF: predicated region fallthrough
CT: control target
= control target key end

     0   :  { %s5183_s25 = smov 0   ;;  %s5185_s26 = smov 0   ;;  %s6078_s0 = inlined_call_operand.vmem [shape: f32[16,128], index: 0, kind: input, shape index: {}]   ;;  %s6079_s1 = inlined_call_operand.vmem [shape: f32[4,4,128,32], index: 1, kind: input, shape index: {}]   ;;  %s6080_s2 = inlined_call_operand.vmem [shape: f32[4,4,1,32], index: 2, kind: input, shape index: {}]   ;;  %s6081_s3 = inlined_call_operand.vmem [shape: f32[4,4,128,32], index: 3, kind: input, shape index: {}]   ;;  %s6082_s4 = inlined_call_operand.vmem [shape: f32[4,4,1,32], index: 4, kind: input, shape index: {}]   ;;  %s6083_s5 = inlined_call_operand.vmem [shape: f32[4,4,128,32], index: 5, kind: input, shape index: {}]   ;;  %s6084_s6 = inlined_call_operand.vmem [shape: f32[4,4,1,32], index: 6, kind: input, shape index: {}]   ;;  %s6085_s7 = inlined_call_operand.vmem [shape: f32[4,4,32,128], index: 7, kind: input, shape index: {}]   ;;  %s6086_s8 = inlined_call_operand.vmem [shape: f32[4,1,128], index: 8, kind: input, shape index: {}]   ;;  %s6087_s9 = inlined_call_operand.vmem [shape: f32[4,128,128], index: 9, kind: input, shape index: {}]   ;;  %s6088_s10 = inlined_call_operand.vmem [shape: f32[4,1,128], index: 10, kind: input, shape index: {}]   ;;  %s6089_s11 = inlined_call_operand.vmem [shape: f32[4,1,128], index: 11, kind: input, shape index: {}]   ;;  %s6090_s12 = inlined_call_operand.vmem [shape: f32[4,1,128], index: 12, kind: input, shape index: {}]   ;;  %s6091_s13 = inlined_call_operand.vmem [shape: f32[4,128,128], index: 13, kind: input, shape index: {}]   ;;  %s6092_s14 = inlined_call_operand.vmem [shape: f32[4,1,128], index: 14, kind: input, shape index: {}]   ;;  %s6093_s15 = inlined_call_operand.vmem [shape: f32[4,128,128], index: 15, kind: input, shape index: {}]   ;;  %s6094_s16 = inlined_call_operand.vmem [shape: f32[4,1,128], index: 16, kind: input, shape index: {}]   ;;  %s6095_s17 = inlined_call_operand.vmem [shape: f32[4,1,128], index: 17, kind: input, shape index: {}]   ;;  %s6096_s18 = inlined_call_operand.vmem [shape: f32[4,1,128], index: 18, kind: input, shape index: {}]   ;;  %s6097_s19 = inlined_call_operand.vmem [shape: f32[128,128], index: 19, kind: input, shape index: {}]   ;;  %s6098_s20 = inlined_call_operand.vmem [shape: f32[1,128], index: 20, kind: input, shape index: {}]   ;;  %s6099_s21 = inlined_call_operand.vmem [shape: f32[16,128], index: 21, kind: output, shape index: {}]  }
   0x1   :  { %6109 = sst [smem:[#allocation13_spill]] %s6078_s0  ;;  %s5187_s27 = smov 0  }
   0x2   :  { %6110 = sst [smem:[#allocation14_spill]] %s6079_s1 }
   0x3   :  { %6111 = sst [smem:[#allocation15_spill]] %s6080_s2  ;;  %s5181_s2 = smov 0  }
   0x4   :  { %6112 = sst [smem:[#allocation16_spill]] %s6081_s3  ;;  %s5189_s3 = smov 0  }
   0x5   :  { %6113 = sst [smem:[#allocation17_spill]] %s6082_s4 }
   0x6   :  { %6114 = sst [smem:[#allocation18_spill]] %s6083_s5 }
   0x7   :  { %6115 = sst [smem:[#allocation19_spill]] %s6084_s6 }
   0x8   :  { %6116 = sst [smem:[#allocation20_spill]] %s6085_s7 }
   0x9   :  { %6117 = sst [smem:[#allocation21_spill]] %s6087_s9 }
   0xa   :  { %6118 = sst [smem:[#allocation22_spill]] %s6088_s10 }
   0xb   :  { %6119 = sst [smem:[#allocation23_spill]] %s6089_s11 }
   0xc   :  { %6120 = sst [smem:[#allocation24_spill]] %s6090_s12 }
   0xd   :  { %6121 = sst [smem:[#allocation25_spill]] %s6091_s13 }
   0xe   :  { %6122 = sst [smem:[#allocation26_spill]] %s6094_s16 }
   0xf   :  { %6123 = sst [smem:[#allocation27_spill]] %s6095_s17 }
  0x10   :  { %6124 = sst [smem:[#allocation28_spill]] %s6096_s18 }
  0x11   :  { %6125 = sst [smem:[#allocation29_spill]] %s6097_s19 }
  0x12   :  { %6126 = sst [smem:[#allocation30_spill]] %s6098_s20 }
  0x13   :  { %6127 = sst [smem:[#allocation31_spill]] %s6099_s21 }
  0x14 LB: > { %6128 = sst [smem:[#allocation3_spill]] %s5049_s2  ;;  %s40_s28 = sadd.s32 1, %s5057_s26  ;;  %s5065_s3 = sphi %s5189_s3, %s31_s3   ;;  %s5061_s27 = sphi %s5187_s27, %s6179_s27   ;;  %s5057_s26 = sphi %s5185_s26, %s6178_s26   ;;  %s5053_s25 = sphi %s5183_s25, %s6177_s25   ;;  %s5049_s2 = sphi %s5181_s2, %s6176_s2  }
  0x15   : > { %6129 = sst [smem:[#allocation4_spill]] %s5057_s26  ;;  %s43_s29 = sadd.s32 1, %s5061_s27 }
  0x16   : > { %6130 = sst [smem:[#allocation5_spill]] %s5061_s27  ;;  %p41_p0 = scmp.ge.s32.totalorder %s40_s28, 4 }
  0x17   : > { %6131 = sst [smem:[#allocation6_spill]] %s5065_s3  ;;  %p3777_p1 = scmp.ge.s32.totalorder %s5065_s3, 1 }
  0x18   : > { %p759_p2 = scmp.lt.s32.totalorder %s5065_s3, 9  ;;  %s6181_s28 = smov (%p41_p0, %s40_s28), 0 }
  0x19   : > { %6132 = sst [smem:[#allocation7_spill]] %s6181_s28  ;;  %s6183_s29 = smov (!%p41_p0, %s43_s29), %s5061_s27 }
  0x1a   : > { %p760_p3 = pnand %p3777_p1, %p759_p2  ;;  %p45_p4 = scmp.ge.s32.totalorder %s6183_s29, 2 }
  0x1c   : > { %s6185_s29 = smov (%p45_p4, %s6183_s29), 0  ;;  %763 = sbr.rel (%p760_p3) target bundleno = 5232 (0x1470), region = 104 }
  0x1d   : > { %6133 = sst [smem:[#allocation8_spill]] %s6185_s29 }
  0x21   : > { %p888_p5 = scmp.lt.s32.totalorder %s5053_s25, 1  ;;  %p892_p6 = scmp.lt.s32.totalorder %s5049_s2, 3 }
  0x22   : > { %s6134_s22 = sld [smem:[#allocation13_spill]] }
  0x23   : > { %s6187_s25 = smov (!%p888_p5, %s5053_s25), 1  ;;  %s6135_s28 = sld [smem:[#allocation14_spill]] }
  0x24   : > { %s5215_s0 = scalar_select %p892_p6, %s5049_s2, 3 }
  0x25   : > { %s3778_s4 = sshll.u32 %s6187_s25, 3  ;;  %s6137_s19 = sld [smem:[#allocation15_spill]] }
  0x26   : > { %s4003_s1 = sshll.u32 %s5215_s0, 9  ;;  %s3781_s26 = sshll.u32 %s5215_s0, 2 }
  0x27   : > { %s6139_s18 = sld [smem:[#allocation16_spill]]  ;;  %s4006_s21 = sshll.u32 %s5215_s0, 7 }
  0x28   : > { %s891_s23 = scalar_lea.vmem %s6134_s22, %s3778_s4  ;;  %s6141_s17 = sld [smem:[#allocation17_spill]] }
  0x29   : > { %s5224_s27 = scalar_lea.vmem %s6135_s28, %s4003_s1  ;;  %s6144_s6 = sld [smem:[#allocation19_spill]] }
  0x2a   : > { %6136 = sst [smem:[#allocation9_spill]] %s5224_s27  ;;  %s5291_s28 = scalar_lea.vmem %s6093_s15, %s4006_s21 }
  0x2b   : > { %s5230_s2 = scalar_lea.vmem %s6137_s19, %s3781_s26  ;;  %s6143_s27 = sld [smem:[#allocation18_spill]] }
  0x2c   : > { %6138 = sst [smem:[#allocation10_spill]] %s5230_s2 }
  0x2d   : > { %s5235_s30 = scalar_lea.vmem %s6139_s18, %s4003_s1  ;;  %s6145_s7 = sld [smem:[#allocation20_spill]] }
  0x2e   : > { %6140 = sst [smem:[#allocation11_spill]] %s5235_s30  ;;  %s5240_s29 = scalar_lea.vmem %s6141_s17, %s3781_s26 }
  0x2f   : > { %6142 = sst [smem:[#allocation12_spill]] %s5240_s29  ;;  %s5250_s3 = scalar_lea.vmem %s6144_s6, %s3781_s26 }
  0x30   : > { %s6146_s9 = sld [smem:[#allocation21_spill]] }
  0x31   : > { %s5245_s16 = scalar_lea.vmem %s6143_s27, %s4003_s1  ;;  %s6150_s13 = sld [smem:[#allocation25_spill]] }
  0x32   : > { %s6151_s19 = sld [smem:[#allocation26_spill]] }
  0x33   : > { %s5256_s2 = scalar_lea.vmem %s6145_s7, %s4006_s21  ;;  %s6152_s6 = sld [smem:[#allocation27_spill]] }
  0x34   : > { %s6154_s29 = sld [smem:[#allocation31_spill]] }
  0x36   : > { %s5265_s27 = scalar_lea.vmem %s6146_s9, %s4006_s21  ;;  %s6155_s9 = sld [smem:[#allocation3_spill]] }
  0x37   : > { %s5282_s22 = scalar_lea.vmem %s6150_s13, %s4006_s21  ;;  %s6153_s13 = sld [smem:[#allocation28_spill]] }
  0x38   : > { %s956_s26 = scalar_lea.vmem %s6151_s19, %s5215_s0 }
  0x39   : > { %s959_s12 = scalar_lea.vmem %s6152_s6, %s5215_s0 }
  0x3a   : > { %s5308_s17 = scalar_lea.vmem %s6154_s29, %s3778_s4 }
  0x3c   : > { %p3797_p7 = scmp.ne.s32.totalorder %s6155_s9, 0 }
  0x3d   : > { %s962_s11 = scalar_lea.vmem %s6153_s13, %s5215_s0 }
  0x3e   : > { %970 = sbr.rel (%p3797_p7) target bundleno = 69 (0x45), region = 108 }
  0x43   : > { %v971_v0 = vld [vmem:[%s891_s23] sm:$0xff] }
  0x44   : > { %972 = vst [vmem:[#allocation2] sm:$0xff] %v971_v0 }
  0x45 PF: > { %s6156_s21 = sld [smem:[#allocation11_spill]]  ;;  %v5067_v3 = vmov 0.0   ;;  %vm5068_vm0 = vmmov 0   ;;  %vm1258_vm1 = vcmask 261120   ;;  %v1180_v43 = vld [vmem:[%s5245_s16 + $0x78] sm:$0xff]  ;;  %v1179_v44 = vld [vmem:[%s5245_s16 + $0x70] sm:$0xff]  ;;  %v974_v59 = vlaneseq  ;;  %s6167_s9 = scalar_lea.vmem %s6092_s14, %s5215_s0 }
  0x46   : > { %s6157_s19 = sld [smem:[#allocation9_spill]]  ;;  %4353 = vmatprep.subr.mxu1 %v5067_v3  ;;  %4318 = vmatprep.subr.mxu0 %v5067_v3  ;;  %v1178_v45 = vld [vmem:[%s5245_s16 + $0x68] sm:$0xff]  ;;  %v1177_v46 = vld [vmem:[%s5245_s16 + $0x60] sm:$0xff]  ;;  %v1176_v47 = vld [vmem:[%s5245_s16 + $0x58] sm:$0xff]  ;;  %vm1336_vm3 = vcmask 64512  }
  0x47   : > { %s6158_s6 = sld [smem:[#allocation12_spill]]  ;;  %4385 = vmatprep.mubr.msk.f32.mxu1 %vm5068_vm0, %v5067_v3  ;;  %4350 = vmatprep.mubr.msk.f32.mxu0 %vm5068_vm0, %v5067_v3  ;;  %v1175_v48 = vld [vmem:[%s5245_s16 + $0x50] sm:$0xff]  ;;  %v1174_v49 = vld [vmem:[%s5245_s16 + $0x48] sm:$0xff]  ;;  %v1173_v50 = vld [vmem:[%s5245_s16 + $0x40] sm:$0xff]  ;;  %v5431_v60 = vshrl.u32 %v974_v59, 7  ;;  %v5433_v61 = vand.u32 127, %v974_v59 }
  0x48   : > { %s6159_s10 = sld [smem:[#allocation10_spill]]  ;;  %v1172_v51 = vld [vmem:[%s5245_s16 + $0x38] sm:$0xff]  ;;  %v1171_v52 = vld [vmem:[%s5245_s16 + $0x30] sm:$0xff]  ;;  %v1170_v53 = vld [vmem:[%s5245_s16 + $0x28] sm:$0xff] }
  0x49   : > { %v1169_v54 = vld [vmem:[%s5245_s16 + $0x20] sm:$0xff]  ;;  %v1168_v55 = vld [vmem:[%s5245_s16 + $0x18] sm:$0xff]  ;;  %v1167_v56 = vld [vmem:[%s5245_s16 + $0x10] sm:$0xff]  ;;  %vm978_vm2 = vcmp.ge.s32.totalorder %v5431_v60, %v5433_v61  ;;  %s6163_s24 = sld [smem:[#allocation23_spill]] }
  0x4a   : > { %v1166_v57 = vld [vmem:[%s5245_s16 + $0x8] sm:$0xff]  ;;  %v1165_v58 = vld [vmem:[%s5245_s16] sm:$0xff]  ;;  %v3854_v59 = vld [vmem:[%s5245_s16 + $0xf0] sm:$0xff]  ;;  %s6165_s7 = sld [smem:[#allocation24_spill]] }
  0x4b   : > { %v1087_v1 = vld [vmem:[%s6156_s21 + $0x78] sm:$0xff]  ;;  %v1086_v4 = vld [vmem:[%s6156_s21 + $0x70] sm:$0xff]  ;;  %v1085_v6 = vld [vmem:[%s6156_s21 + $0x68] sm:$0xff]  ;;  %s6171_s4 = sld [smem:[#allocation3_spill]] }
  0x4c   : > { %v994_v2 = vld [vmem:[%s6157_s19 + $0x78] sm:$0xff]  ;;  %v993_v5 = vld [vmem:[%s6157_s19 + $0x70] sm:$0xff]  ;;  %4354 = vmatpush3.msra.mxu1 %v1087_v1  ;;  %v992_v7 = vld [vmem:[%s6157_s19 + $0x68] sm:$0xff] }
  0x4d   : > { %4319 = vmatpush3.msra.mxu0 %v994_v2  ;;  %4355 = vmatprep.subr.mxu1 %v5067_v3  ;;  %v1084_v8 = vld [vmem:[%s6156_s21 + $0x60] sm:$0xff]  ;;  %v1083_v10 = vld [vmem:[%s6156_s21 + $0x58] sm:$0xff]  ;;  %v1082_v12 = vld [vmem:[%s6156_s21 + $0x50] sm:$0xff] }
  0x4e   : > { %4320 = vmatprep.subr.mxu0 %v5067_v3  ;;  %4356 = vmatpush3.msra.mxu1 %v1086_v4  ;;  %v991_v9 = vld [vmem:[%s6157_s19 + $0x60] sm:$0xff]  ;;  %v990_v11 = vld [vmem:[%s6157_s19 + $0x58] sm:$0xff]  ;;  %v989_v13 = vld [vmem:[%s6157_s19 + $0x50] sm:$0xff] }
  0x4f   : > { %4321 = vmatpush3.msra.mxu0 %v993_v5  ;;  %4357 = vmatprep.subr.mxu1 %v5067_v3  ;;  %v1081_v14 = vld [vmem:[%s6156_s21 + $0x48] sm:$0xff]  ;;  %v1080_v16 = vld [vmem:[%s6156_s21 + $0x40] sm:$0xff]  ;;  %v1079_v18 = vld [vmem:[%s6156_s21 + $0x38] sm:$0xff]  ;;  %s6164_s20 = scalar_lea.vmem %s6163_s24, %s5215_s0 }
  0x50   : > { %4322 = vmatprep.subr.mxu0 %v5067_v3  ;;  %4358 = vmatpush3.msra.mxu1 %v1085_v6  ;;  %v988_v15 = vld [vmem:[%s6157_s19 + $0x48] sm:$0xff]  ;;  %v987_v17 = vld [vmem:[%s6157_s19 + $0x40] sm:$0xff]  ;;  %v986_v19 = vld [vmem:[%s6157_s19 + $0x38] sm:$0xff]  ;;  %s6166_s5 = scalar_lea.vmem %s6165_s7, %s5215_s0 }
  0x51   : > { %4323 = vmatpush3.msra.mxu0 %v992_v7  ;;  %4359 = vmatprep.subr.mxu1 %v5067_v3  ;;  %v1078_v20 = vld [vmem:[%s6156_s21 + $0x30] sm:$0xff]  ;;  %v1077_v22 = vld [vmem:[%s6156_s21 + $0x28] sm:$0xff]  ;;  %v1076_v24 = vld [vmem:[%s6156_s21 + $0x20] sm:$0xff]  ;;  %p3999_p8 = scmp.ne.s32.totalorder %s6171_s4, 3 }
  0x52   : > { %4324 = vmatprep.subr.mxu0 %v5067_v3  ;;  %4360 = vmatpush3.msra.mxu1 %v1084_v8  ;;  %v985_v21 = vld [vmem:[%s6157_s19 + $0x30] sm:$0xff]  ;;  %v984_v23 = vld [vmem:[%s6157_s19 + $0x28] sm:$0xff]  ;;  %v983_v25 = vld [vmem:[%s6157_s19 + $0x20] sm:$0xff]  ;;  %s6174_s25 = sld [smem:[#allocation30_spill]] (!%p3999_p8) }
  0x53   : > { %4325 = vmatpush3.msra.mxu0 %v991_v9  ;;  %4361 = vmatprep.subr.mxu1 %v5067_v3  ;;  %v1075_v26 = vld [vmem:[%s6156_s21 + $0x18] sm:$0xff]  ;;  %v1074_v28 = vld [vmem:[%s6156_s21 + $0x10] sm:$0xff]  ;;  %v1073_v30 = vld [vmem:[%s6156_s21 + $0x8] sm:$0xff] }
  0x54   : > { %4326 = vmatprep.subr.mxu0 %v5067_v3  ;;  %4362 = vmatpush3.msra.mxu1 %v1083_v10  ;;  %v982_v27 = vld [vmem:[%s6157_s19 + $0x18] sm:$0xff]  ;;  %v981_v29 = vld [vmem:[%s6157_s19 + $0x10] sm:$0xff]  ;;  %v980_v31 = vld [vmem:[%s6157_s19 + $0x8] sm:$0xff] }
  0x55   : > { %4327 = vmatpush3.msra.mxu0 %v990_v11  ;;  %4363 = vmatprep.subr.mxu1 %v5067_v3  ;;  %v1072_v32 = vld [vmem:[%s6156_s21] sm:$0xff]  ;;  %v3837_v10 = vld [vmem:[%s6156_s21 + $0xf8] sm:$0xff]  ;;  %v3836_v11 = vld [vmem:[%s6156_s21 + $0xf0] sm:$0xff] }
  0x56   : > { %4328 = vmatprep.subr.mxu0 %v5067_v3  ;;  %4364 = vmatpush3.msra.mxu1 %v1082_v12  ;;  %v979_v33 = vld [vmem:[%s6157_s19] sm:$0xff]  ;;  %v3989_v61 = vld [vmem:[%s5256_s2 + $0x78] sm:$0xff] }
  0x57   : > { %4329 = vmatpush3.msra.mxu0 %v989_v13  ;;  %4365 = vmatprep.subr.mxu1 %v5067_v3  ;;  %v5375_v34 = vld [vmem:[#allocation2] sm:$0xff] }
  0x58   : > { %4330 = vmatprep.subr.mxu0 %v5067_v3  ;;  %4366 = vmatpush3.msra.mxu1 %v1081_v14  ;;  %v3799_v35 = vld [vmem:[%s6158_s6] ss:$0 sm:$0xff]  ;;  %v3835_v14 = vld [vmem:[%s6156_s21 + $0xe8] sm:$0xff] }
  0x59   : > { %4331 = vmatpush3.msra.mxu0 %v988_v15  ;;  %4367 = vmatprep.subr.mxu1 %v5067_v3  ;;  %v3798_v36 = vld [vmem:[%s6159_s10] ss:$0 sm:$0xff] }
  0x5a   : > { %4332 = vmatprep.subr.mxu0 %v5067_v3  ;;  %4368 = vmatpush3.msra.mxu1 %v1080_v16  ;;  %v3800_v8 = vld [vmem:[%s5250_s3] ss:$0 sm:$0xff]  ;;  %v3833_v16 = vld [vmem:[%s6156_s21 + $0xd8] sm:$0xff] }
  0x5b   : > { %4333 = vmatpush3.msra.mxu0 %v987_v17  ;;  %4369 = vmatprep.subr.mxu1 %v5067_v3  ;;  %v3834_v15 = vld [vmem:[%s6156_s21 + $0xe0] sm:$0xff]  ;;  %v3832_v17 = vld [vmem:[%s6156_s21 + $0xd0] sm:$0xff] }
  0x5c   : > { %4334 = vmatprep.subr.mxu0 %v5067_v3  ;;  %4370 = vmatpush3.msra.mxu1 %v1079_v18  ;;  %v3831_v18 = vld [vmem:[%s6156_s21 + $0xc8] sm:$0xff] }
  0x5d   : > { %4335 = vmatpush3.msra.mxu0 %v986_v19  ;;  %4371 = vmatprep.subr.mxu1 %v5067_v3  ;;  %v3830_v19 = vld [vmem:[%s6156_s21 + $0xc0] sm:$0xff] }
  0x5e   : > { %4336 = vmatprep.subr.mxu0 %v5067_v3  ;;  %4372 = vmatpush3.msra.mxu1 %v1078_v20  ;;  %v3829_v20 = vld [vmem:[%s6156_s21 + $0xb8] sm:$0xff] }
  0x5f   : > { %4337 = vmatpush3.msra.mxu0 %v985_v21  ;;  %4373 = vmatprep.subr.mxu1 %v5067_v3  ;;  %v3828_v21 = vld [vmem:[%s6156_s21 + $0xb0] sm:$0xff] }
  0x60   : > { %4338 = vmatprep.subr.mxu0 %v5067_v3  ;;  %4374 = vmatpush3.msra.mxu1 %v1077_v22  ;;  %v3827_v22 = vld [vmem:[%s6156_s21 + $0xa8] sm:$0xff] }
  0x61   : > { %4339 = vmatpush3.msra.mxu0 %v984_v23  ;;  %4375 = vmatprep.subr.mxu1 %v5067_v3  ;;  %v3826_v23 = vld [vmem:[%s6156_s21 + $0xa0] sm:$0xff] }
  0x62   : > { %4340 = vmatprep.subr.mxu0 %v5067_v3  ;;  %4376 = vmatpush3.msra.mxu1 %v1076_v24  ;;  %v3825_v24 = vld [vmem:[%s6156_s21 + $0x98] sm:$0xff] }
  0x63   : > { %4341 = vmatpush3.msra.mxu0 %v983_v25  ;;  %4377 = vmatprep.subr.mxu1 %v5067_v3  ;;  %v3824_v25 = vld [vmem:[%s6156_s21 + $0x90] sm:$0xff] }
  0x64   : > { %4342 = vmatprep.subr.mxu0 %v5067_v3  ;;  %4378 = vmatpush3.msra.mxu1 %v1075_v26  ;;  %v3823_v26 = vld [vmem:[%s6156_s21 + $0x88] sm:$0xff] }
  0x65   : > { %4343 = vmatpush3.msra.mxu0 %v982_v27  ;;  %4379 = vmatprep.subr.mxu1 %v5067_v3  ;;  %v3822_v27 = vld [vmem:[%s6156_s21 + $0x80] sm:$0xff] }
  0x66   : > { %4344 = vmatprep.subr.mxu0 %v5067_v3  ;;  %4380 = vmatpush3.msra.mxu1 %v1074_v28 }
  0x67   : > { %4345 = vmatpush3.msra.mxu0 %v981_v29  ;;  %4381 = vmatprep.subr.mxu1 %v5067_v3 }
  0x68   : > { %4346 = vmatprep.subr.mxu0 %v5067_v3  ;;  %4382 = vmatpush3.msra.mxu1 %v1073_v30 }
  0x69   : > { %4347 = vmatpush3.msra.mxu0 %v980_v31  ;;  %4383 = vmatprep.subr.mxu1 %v5067_v3  ;;  %v3819_v31 = vld [vmem:[%s6157_s19 + $0xf8] sm:$0xff] }
  0x6a   : > { %4348 = vmatprep.subr.mxu0 %v5067_v3  ;;  %4384 = vmatpush3.msra.mxu1 %v1072_v32  ;;  %v3818_v32 = vld [vmem:[%s6157_s19 + $0xf0] sm:$0xff] }
  0x6b   : > { %4349 = vmatpush3.msra.mxu0 %v979_v33  ;;  %4386 = vmatmul.mubr.f32.vlgmr.msra.gmra.mxu1 %v5375_v34  ;;  %v3817_v33 = vld [vmem:[%s6157_s19 + $0xe8] sm:$0xff] }
  0x6c   : > { %4351 = vmatmul.mubr.f32.vlgmr.msra.gmra.mxu0 %v5375_v34  ;;  %4423 = vmatprep.subr.mxu1 %v5067_v3 }
  0x6d   : > { %4425 = vmatprep.mubr.msk.f32.mxu1 %vm5068_vm0, %v5067_v3  ;;  %4388 = vmatprep.subr.mxu0 %v5067_v3 }
  0x6e   : > { %4420 = vmatprep.mubr.msk.f32.mxu0 %vm5068_vm0, %v5067_v3  ;;  %4389 = vmatpush3.msra.mxu0 %v1180_v43  ;;  %v3808_v43 = vld [vmem:[%s6157_s19 + $0xa0] sm:$0xff] }
  0x6f   : > { %4390 = vmatprep.subr.mxu0 %v5067_v3 }
  0x70   : > { %4391 = vmatpush3.msra.mxu0 %v1179_v44  ;;  %v3807_v44 = vld [vmem:[%s6157_s19 + $0x98] sm:$0xff] }
  0x71   : > { %4392 = vmatprep.subr.mxu0 %v5067_v3 }
  0x72   : > { %4393 = vmatpush3.msra.mxu0 %v1178_v45  ;;  %v3806_v45 = vld [vmem:[%s6157_s19 + $0x90] sm:$0xff] }
  0x73   : > { %4394 = vmatprep.subr.mxu0 %v5067_v3 }
  0x74   : > { %4395 = vmatpush3.msra.mxu0 %v1177_v46  ;;  %v3805_v46 = vld [vmem:[%s6157_s19 + $0x88] sm:$0xff] }
  0x75   : > { %4396 = vmatprep.subr.mxu0 %v5067_v3 }
  0x76   : > { %4397 = vmatpush3.msra.mxu0 %v1176_v47  ;;  %v3804_v47 = vld [vmem:[%s6157_s19 + $0x80] sm:$0xff] }
  0x77   : > { %4398 = vmatprep.subr.mxu0 %v5067_v3 }
  0x78   : > { %4399 = vmatpush3.msra.mxu0 %v1175_v48  ;;  %v3839_v48 = vld [vmem:[%s6158_s6 + $0x1] ss:$0 sm:$0xff] }
  0x79   : > { %4400 = vmatprep.subr.mxu0 %v5067_v3 }
  0x7a   : > { %4401 = vmatpush3.msra.mxu0 %v1174_v49 }
  0x7b   : > { %4402 = vmatprep.subr.mxu0 %v5067_v3 }
  0x7c   : > { %4403 = vmatpush3.msra.mxu0 %v1173_v50 }
  0x7d   : > { %4404 = vmatprep.subr.mxu0 %v5067_v3 }
  0x7e   : > { %4405 = vmatpush3.msra.mxu0 %v1172_v51 }
  0x7f   : > { %4406 = vmatprep.subr.mxu0 %v5067_v3 }
  0x80   : > { %4407 = vmatpush3.msra.mxu0 %v1171_v52 }
  0x81   : > { %4408 = vmatprep.subr.mxu0 %v5067_v3 }
  0x82   : > { %4409 = vmatpush3.msra.mxu0 %v1170_v53 }
  0x83   : > { %4410 = vmatprep.subr.mxu0 %v5067_v3 }
  0x84   : > { %4411 = vmatpush3.msra.mxu0 %v1169_v54  ;;  %v3821_v54 = vld [vmem:[%s6159_s10 + $0x1] ss:$0 sm:$0xff] }
  0x85   : > { %4412 = vmatprep.subr.mxu0 %v5067_v3 }
  0x86   : > { %4413 = vmatpush3.msra.mxu0 %v1168_v55 }
  0x87   : > { %4414 = vmatprep.subr.mxu0 %v5067_v3 }
  0x88   : > { %4415 = vmatpush3.msra.mxu0 %v1167_v56 }
  0x89   : > { %4416 = vmatprep.subr.mxu0 %v5067_v3 }
  0x8a   : > { %4417 = vmatpush3.msra.mxu0 %v1166_v57 }
  0x8b   : > { %4418 = vmatprep.subr.mxu0 %v5067_v3 }
  0x8c   : > { %4419 = vmatpush3.msra.mxu0 %v1165_v58  ;;  %v3855_v58 = vld [vmem:[%s5245_s16 + $0xf8] sm:$0xff] }
  0x8d   : > { %4421 = vmatmul.mubr.f32.vlgmr.msra.gmra.mxu0 %v5375_v34  ;;  %4468 = vmatprep.subr.mxu0 %v5067_v3 }
  0x8e   : > { %4500 = vmatprep.mubr.msk.f32.mxu0 %vm5068_vm0, %v5067_v3  ;;  %4469 = vmatpush3.msra.mxu0 %v3837_v10  ;;  %v3842_v10 = vld [vmem:[%s5245_s16 + $0x90] sm:$0xff] }
  0x8f   : > { %4470 = vmatprep.subr.mxu0 %v5067_v3 }
  0x90   : > { %4471 = vmatpush3.msra.mxu0 %v3836_v11  ;;  %v3841_v11 = vld [vmem:[%s5245_s16 + $0x88] sm:$0xff] }
  0x91   : > { %4472 = vmatprep.subr.mxu0 %v5067_v3 }
  0x92   : > { %4473 = vmatpush3.msra.mxu0 %v3835_v14 }
  0x93   : > { %4474 = vmatprep.subr.mxu0 %v5067_v3 }
  0x94   : > { %4475 = vmatpush3.msra.mxu0 %v3834_v15 }
  0x95   : > { %4476 = vmatprep.subr.mxu0 %v5067_v3 }
  0x96   : > { %4477 = vmatpush3.msra.mxu0 %v3833_v16 }
  0x97   : > { %4478 = vmatprep.subr.mxu0 %v5067_v3 }
  0x98   : > { %4479 = vmatpush3.msra.mxu0 %v3832_v17 }
  0x99   : > { %4480 = vmatprep.subr.mxu0 %v5067_v3 }
  0x9a   : > { %4481 = vmatpush3.msra.mxu0 %v3831_v18 }
  0x9b   : > { %4482 = vmatprep.subr.mxu0 %v5067_v3 }
  0x9c   : > { %4483 = vmatpush3.msra.mxu0 %v3830_v19 }
  0x9d   : > { %4484 = vmatprep.subr.mxu0 %v5067_v3 }
  0x9e   : > { %4485 = vmatpush3.msra.mxu0 %v3829_v20 }
  0x9f   : > { %4486 = vmatprep.subr.mxu0 %v5067_v3 }
  0xa0   : > { %4487 = vmatpush3.msra.mxu0 %v3828_v21 }
  0xa1   : > { %4488 = vmatprep.subr.mxu0 %v5067_v3 }
  0xa2   : > { %4489 = vmatpush3.msra.mxu0 %v3827_v22  ;;  %v3857_v22 = vld [vmem:[%s5250_s3 + $0x1] ss:$0 sm:$0xff] }
  0xa3   : > { %4490 = vmatprep.subr.mxu0 %v5067_v3 }
  0xa4   : > { %4491 = vmatpush3.msra.mxu0 %v3826_v23 }
  0xa5   : > { %4492 = vmatprep.subr.mxu0 %v5067_v3 }
  0xa6   : > { %4493 = vmatpush3.msra.mxu0 %v3825_v24 }
  0xa7   : > { %4494 = vmatprep.subr.mxu0 %v5067_v3 }
  0xa8   : > { %4495 = vmatpush3.msra.mxu0 %v3824_v25 }
  0xa9   : > { %4496 = vmatprep.subr.mxu0 %v5067_v3 }
  0xaa   : > { %4497 = vmatpush3.msra.mxu0 %v3823_v26  ;;  %v3864_v26 = vld [vmem:[%s5256_s2 + $0x38] sm:$0xff] }
  0xab   : > { %4498 = vmatprep.subr.mxu0 %v5067_v3 }
  0xac   : > { %4499 = vmatpush3.msra.mxu0 %v3822_v27  ;;  %v3863_v27 = vld [vmem:[%s5256_s2 + $0x30] sm:$0xff] }
  0xad   : > { %4501 = vmatmul.mubr.f32.vlgmr.msra.gmra.mxu0 %v5375_v34  ;;  %4538 = vmatprep.subr.mxu0 %v5067_v3 }
  0xae   : > { %4540 = vmatprep.mubr.msk.f32.mxu0 %vm5068_vm0, %v5067_v3 }
 0x12b   : > { %v1161_v37 = vpop.f32.mrf.mxu1 }
 0x12c   : > { %v1068_v38 = vpop.f32.mrf.mxu0  ;;  %v1162_v39 = vadd.f32 %v3799_v35, %v1161_v37  ;;  %v3816_v35 = vld [vmem:[%s6157_s19 + $0xe0] sm:$0xff]  ;;  %v3814_v37 = vld [vmem:[%s6157_s19 + $0xd0] sm:$0xff] }
 0x12d   : > { %v1069_v40 = vadd.f32 %v3798_v36, %v1068_v38  ;;  %v4387_v41 = vpop.f32.mrf.mxu1  ;;  %v3815_v36 = vld [vmem:[%s6157_s19 + $0xd8] sm:$0xff]  ;;  %v3813_v38 = vld [vmem:[%s6157_s19 + $0xc8] sm:$0xff] }
 0x12e   : > { %v4352_v42 = vpop.f32.mrf.mxu0  ;;  %4424 = vmatpush3.xpose.msk.msra.mxu1 %vm1258_vm1, %v1162_v39  ;;  %v3812_v39 = vld [vmem:[%s6157_s19 + $0xc0] sm:$0xff]  ;;  %v3810_v41 = vld [vmem:[%s6157_s19 + $0xb0] sm:$0xff] }
 0x12f   : > { %4428 = vmatprep.subr.mxu1 %v5067_v3  ;;  %v3809_v42 = vld [vmem:[%s6157_s19 + $0xa8] sm:$0xff] }
 0x131   : > { %4426 = vmatmul.mubr.msk.f32.vlgmr.msra.gmra.mxu1 %vm1258_vm1, %v1069_v40  ;;  %v3811_v40 = vld [vmem:[%s6157_s19 + $0xb8] sm:$0xff] }
 0x132   : > { %4430 = vmatprep.mubr.msk.f32.mxu1 %vm5068_vm0, %v5067_v3 }
 0x14d   : > { %v1254_v9 = vpop.f32.mrf.mxu0 }
 0x14e   : > { %v1255_v12 = vadd.f32 %v3800_v8, %v1254_v9  ;;  %v3844_v8 = vld [vmem:[%s5245_s16 + $0xa0] sm:$0xff]  ;;  %v3843_v9 = vld [vmem:[%s5245_s16 + $0x98] sm:$0xff] }
 0x14f   : > { %v4422_v13 = vpop.f32.mrf.mxu0 }
 0x150   : > { %4429 = vmatpush3.msra.mxu1 %v1255_v12  ;;  %v3840_v12 = vld [vmem:[%s5245_s16 + $0x80] sm:$0xff] }
 0x151   : > { %4433 = vmatprep.subr.mxu1 %v5067_v3 }
 0x16d   : > { %v1611_v49 = vpop.f32.mrf.mxu0 }
 0x16e   : > { %v1612_v50 = vadd.f32 %v3839_v48, %v1611_v49  ;;  %v3868_v48 = vld [vmem:[%s6157_s19 + $0x108] sm:$0xff]  ;;  %v3867_v49 = vld [vmem:[%s6157_s19 + $0x100] sm:$0xff] }
 0x16f   : > { %v4502_v51 = vpop.f32.mrf.mxu0 }
 0x170   : > { %4539 = vmatpush3.xpose.msk.msra.mxu0 %vm1258_vm1, %v1612_v50  ;;  %v1424_v50 = vld [vmem:[%s5256_s2 + $0x18] sm:$0xff] }
 0x171   : > { %4543 = vmatprep.subr.mxu0 %v5067_v3 }
 0x1f1   : > { %v1331_v62 = vpop.f32.mrf.mxu1 }
 0x1f2   : > { %v1335_v63 = vsel %vm978_vm2, %v1331_v62, -inf  ;;  %v3853_v62 = vld [vmem:[%s5245_s16 + $0xe8] sm:$0xff] }
 0x1f3   : > { %v4427_v0 = vpop.f32.mrf.mxu1  ;;  %v1337_v1 = vsel %vm1336_vm3, %v1335_v63, -inf }
 0x1f4   : > { %1338 = vmax.xlane.f32.xlu0 %v1337_v1  ;;  %v3851_v0 = vld [vmem:[%s5245_s16 + $0xd8] sm:$0xff]  ;;  %v3850_v1 = vld [vmem:[%s5245_s16 + $0xd0] sm:$0xff] }
 0x27d   : > { %v1339_v2 = vpop.xlane.xlu0 %1338 }
 0x27e   : > { %v1340_v4 = vsub.f32 %v1335_v63, %v1339_v2  ;;  %v3852_v63 = vld [vmem:[%s5245_s16 + $0xe0] sm:$0xff]  ;;  %v3849_v2 = vld [vmem:[%s5245_s16 + $0xc8] sm:$0xff] }
 0x280   : > { %v1341_v5 = vmul.f32 1.442695, %v1340_v4  ;;  %v3848_v4 = vld [vmem:[%s5245_s16 + $0xc0] sm:$0xff] }
 0x282   : > { %5006 = vpow2.f32 %v1341_v5  ;;  %v3847_v5 = vld [vmem:[%s5245_s16 + $0xb8] sm:$0xff] }
 0x28f   : > { %v5007_v6 = vpop.eup %5006 }
 0x290   : > { %v1343_v7 = vsel %vm1336_vm3, %v5007_v6, 0.0 }
 0x291   : > { %1344 = vadd.xlane.f32.xlu0 %v1343_v7  ;;  %v3845_v7 = vld [vmem:[%s5245_s16 + $0xa8] sm:$0xff] }
 0x31a   : > { %v1345_v28 = vpop.xlane.xlu0 %1344 }
 0x31b   : > { %5008 = vrcp.f32 %v1345_v28  ;;  %v3862_v28 = vld [vmem:[%s5256_s2 + $0x28] sm:$0xff] }
 0x328   : > { %v5009_v29 = vpop.eup %5008 }
 0x329   : > { %v1347_v30 = vmul.f32 %v5009_v29, %v5007_v6  ;;  %v3846_v6 = vld [vmem:[%s5245_s16 + $0xb0] sm:$0xff]  ;;  %v3861_v29 = vld [vmem:[%s5256_s2 + $0x20] sm:$0xff] }
 0x32b   : > { %4431 = vmatmul.mubr.msk.f32.vlgmr.msra.gmra.mxu1 %vm1336_vm3, %v1347_v30 }
 0x32c   : > { %4434 = vmatpush3.msra.mxu1 %v3819_v31  ;;  %4465 = vmatprep.mubr.msk.f32.mxu1 %vm5068_vm0, %v5067_v3 }
 0x32d   : > { %4435 = vmatprep.subr.mxu1 %v5067_v3 }
 0x32e   : > { %4436 = vmatpush3.msra.mxu1 %v3818_v32 }
 0x32f   : > { %4437 = vmatprep.subr.mxu1 %v5067_v3 }
 0x330   : > { %4438 = vmatpush3.msra.mxu1 %v3817_v33  ;;  %v3882_v33 = vld [vmem:[%s6157_s19 + $0x178] sm:$0xff] }
 0x331   : > { %4439 = vmatprep.subr.mxu1 %v5067_v3 }
 0x332   : > { %4440 = vmatpush3.msra.mxu1 %v3816_v35  ;;  %v3881_v35 = vld [vmem:[%s6157_s19 + $0x170] sm:$0xff] }
 0x333   : > { %4441 = vmatprep.subr.mxu1 %v5067_v3 }
 0x334   : > { %4442 = vmatpush3.msra.mxu1 %v3815_v36  ;;  %v3880_v36 = vld [vmem:[%s6157_s19 + $0x168] sm:$0xff] }
 0x335   : > { %4443 = vmatprep.subr.mxu1 %v5067_v3 }
 0x336   : > { %4444 = vmatpush3.msra.mxu1 %v3814_v37  ;;  %v3879_v37 = vld [vmem:[%s6157_s19 + $0x160] sm:$0xff] }
 0x337   : > { %4445 = vmatprep.subr.mxu1 %v5067_v3 }
 0x338   : > { %4446 = vmatpush3.msra.mxu1 %v3813_v38  ;;  %v3878_v38 = vld [vmem:[%s6157_s19 + $0x158] sm:$0xff] }
 0x339   : > { %4447 = vmatprep.subr.mxu1 %v5067_v3 }
 0x33a   : > { %4448 = vmatpush3.msra.mxu1 %v3812_v39  ;;  %v3877_v39 = vld [vmem:[%s6157_s19 + $0x150] sm:$0xff] }
 0x33b   : > { %4449 = vmatprep.subr.mxu1 %v5067_v3 }
 0x33c   : > { %4450 = vmatpush3.msra.mxu1 %v3811_v40  ;;  %v3876_v40 = vld [vmem:[%s6157_s19 + $0x148] sm:$0xff] }
 0x33d   : > { %4451 = vmatprep.subr.mxu1 %v5067_v3 }
 0x33e   : > { %4452 = vmatpush3.msra.mxu1 %v3810_v41  ;;  %v3875_v41 = vld [vmem:[%s6157_s19 + $0x140] sm:$0xff] }
 0x33f   : > { %4453 = vmatprep.subr.mxu1 %v5067_v3 }
 0x340   : > { %4454 = vmatpush3.msra.mxu1 %v3809_v42  ;;  %v3874_v42 = vld [vmem:[%s6157_s19 + $0x138] sm:$0xff] }
 0x341   : > { %4455 = vmatprep.subr.mxu1 %v5067_v3 }
 0x342   : > { %4456 = vmatpush3.msra.mxu1 %v3808_v43  ;;  %v3873_v43 = vld [vmem:[%s6157_s19 + $0x130] sm:$0xff] }
 0x343   : > { %4457 = vmatprep.subr.mxu1 %v5067_v3 }
 0x344   : > { %4458 = vmatpush3.msra.mxu1 %v3807_v44  ;;  %v3872_v44 = vld [vmem:[%s6157_s19 + $0x128] sm:$0xff] }
 0x345   : > { %4459 = vmatprep.subr.mxu1 %v5067_v3 }
 0x346   : > { %4460 = vmatpush3.msra.mxu1 %v3806_v45  ;;  %v3871_v45 = vld [vmem:[%s6157_s19 + $0x120] sm:$0xff] }
 0x347   : > { %4461 = vmatprep.subr.mxu1 %v5067_v3 }
 0x348   : > { %4462 = vmatpush3.msra.mxu1 %v3805_v46  ;;  %v3870_v46 = vld [vmem:[%s6157_s19 + $0x118] sm:$0xff] }
 0x349   : > { %4463 = vmatprep.subr.mxu1 %v5067_v3 }
 0x34a   : > { %4464 = vmatpush3.msra.mxu1 %v3804_v47  ;;  %v3869_v47 = vld [vmem:[%s6157_s19 + $0x110] sm:$0xff] }
 0x34b   : > { %4466 = vmatmul.mubr.f32.vlgmr.msra.gmra.mxu1 %v5375_v34  ;;  %4503 = vmatprep.subr.mxu1 %v5067_v3 }
 0x34c   : > { %4535 = vmatprep.mubr.msk.f32.mxu1 %vm5068_vm0, %v5067_v3  ;;  %4504 = vmatpush3.msra.mxu1 %v3855_v58  ;;  %v3899_v58 = vld [vmem:[%s6156_s21 + $0x170] sm:$0xff] }
 0x34d   : > { %4505 = vmatprep.subr.mxu1 %v5067_v3 }
 0x34e   : > { %4506 = vmatpush3.msra.mxu1 %v3854_v59  ;;  %v3898_v59 = vld [vmem:[%s6156_s21 + $0x168] sm:$0xff] }
 0x34f   : > { %4507 = vmatprep.subr.mxu1 %v5067_v3 }
 0x350   : > { %4508 = vmatpush3.msra.mxu1 %v3853_v62  ;;  %v3897_v62 = vld [vmem:[%s6156_s21 + $0x160] sm:$0xff] }
 0x351   : > { %4509 = vmatprep.subr.mxu1 %v5067_v3 }
 0x352   : > { %4510 = vmatpush3.msra.mxu1 %v3852_v63  ;;  %v3895_v63 = vld [vmem:[%s6156_s21 + $0x150] sm:$0xff] }
 0x353   : > { %4511 = vmatprep.subr.mxu1 %v5067_v3 }
 0x354   : > { %4512 = vmatpush3.msra.mxu1 %v3851_v0  ;;  %v3894_v0 = vld [vmem:[%s6156_s21 + $0x148] sm:$0xff] }
 0x355   : > { %4513 = vmatprep.subr.mxu1 %v5067_v3 }
 0x356   : > { %4514 = vmatpush3.msra.mxu1 %v3850_v1  ;;  %v3893_v1 = vld [vmem:[%s6156_s21 + $0x140] sm:$0xff] }
 0x357   : > { %4515 = vmatprep.subr.mxu1 %v5067_v3 }
 0x358   : > { %4516 = vmatpush3.msra.mxu1 %v3849_v2  ;;  %v3892_v2 = vld [vmem:[%s6156_s21 + $0x138] sm:$0xff] }
 0x359   : > { %4517 = vmatprep.subr.mxu1 %v5067_v3 }
 0x35a   : > { %4518 = vmatpush3.msra.mxu1 %v3848_v4  ;;  %v3891_v4 = vld [vmem:[%s6156_s21 + $0x130] sm:$0xff] }
 0x35b   : > { %4519 = vmatprep.subr.mxu1 %v5067_v3 }
 0x35c   : > { %4520 = vmatpush3.msra.mxu1 %v3847_v5  ;;  %v3890_v5 = vld [vmem:[%s6156_s21 + $0x128] sm:$0xff] }
 0x35d   : > { %4521 = vmatprep.subr.mxu1 %v5067_v3 }
 0x35e   : > { %4522 = vmatpush3.msra.mxu1 %v3846_v6  ;;  %v3889_v6 = vld [vmem:[%s6156_s21 + $0x120] sm:$0xff] }
 0x35f   : > { %4523 = vmatprep.subr.mxu1 %v5067_v3 }
 0x360   : > { %4524 = vmatpush3.msra.mxu1 %v3845_v7  ;;  %v3888_v7 = vld [vmem:[%s6156_s21 + $0x118] sm:$0xff] }
 0x361   : > { %4525 = vmatprep.subr.mxu1 %v5067_v3 }
 0x362   : > { %4526 = vmatpush3.msra.mxu1 %v3844_v8  ;;  %v3887_v8 = vld [vmem:[%s6156_s21 + $0x110] sm:$0xff] }
 0x363   : > { %4527 = vmatprep.subr.mxu1 %v5067_v3 }
 0x364   : > { %4528 = vmatpush3.msra.mxu1 %v3843_v9  ;;  %v3886_v9 = vld [vmem:[%s6156_s21 + $0x108] sm:$0xff] }
 0x365   : > { %4529 = vmatprep.subr.mxu1 %v5067_v3 }
 0x366   : > { %4530 = vmatpush3.msra.mxu1 %v3842_v10  ;;  %v3885_v10 = vld [vmem:[%s6156_s21 + $0x100] sm:$0xff] }
 0x367   : > { %4531 = vmatprep.subr.mxu1 %v5067_v3 }
 0x368   : > { %4532 = vmatpush3.msra.mxu1 %v3841_v11 }
 0x369   : > { %4533 = vmatprep.subr.mxu1 %v5067_v3 }
 0x36a   : > { %4534 = vmatpush3.msra.mxu1 %v3840_v12 }
 0x36b   : > { %4536 = vmatmul.mubr.f32.vlgmr.msra.gmra.mxu1 %v5375_v34  ;;  %4548 = vmatprep.subr.mxu1 %v5067_v3 }
 0x36c   : > { %4556 = vmatprep.mubr.msk.f32.mxu1 %vm5068_vm0, %v5067_v3  ;;  %4549 = vmatpush3.msra.mxu1 %v3864_v26  ;;  %v3916_v26 = vld [vmem:[%s5245_s16 + $0x168] sm:$0xff] }
 0x36d   : > { %4550 = vmatprep.subr.mxu1 %v5067_v3 }
 0x36e   : > { %4551 = vmatpush3.msra.mxu1 %v3863_v27  ;;  %v3915_v27 = vld [vmem:[%s5245_s16 + $0x160] sm:$0xff] }
 0x36f   : > { %4552 = vmatprep.subr.mxu1 %v5067_v3 }
 0x370   : > { %4553 = vmatpush3.msra.mxu1 %v3862_v28  ;;  %v3914_v28 = vld [vmem:[%s5245_s16 + $0x158] sm:$0xff] }
 0x371   : > { %4554 = vmatprep.subr.mxu1 %v5067_v3 }
 0x372   : > { %4555 = vmatpush3.msra.mxu1 %v3861_v29  ;;  %v3913_v29 = vld [vmem:[%s5245_s16 + $0x150] sm:$0xff] }
 0x373   : > { %4559 = vmatprep.subr.mxu1 %v5067_v3 }
 0x3eb   : > { %v5520_v52 = vpop.f32.mrf.mxu1 }
 0x3ed   : > { %v4432_v53 = vpop.f32.mrf.mxu1 }
 0x3ee   : > { %v1423_v53 = vld [vmem:[%s5256_s2 + $0x10] sm:$0xff] }
 0x40b   : > { %v1516_v55 = vpop.f32.mrf.mxu1 }
 0x40c   : > { %v1517_v56 = vadd.f32 %v3821_v54, %v1516_v55  ;;  %v1422_v55 = vld [vmem:[%s5256_s2 + $0x8] sm:$0xff] }
 0x40d   : > { %v4467_v57 = vpop.f32.mrf.mxu1 }
 0x40e   : > { %4541 = vmatmul.mubr.msk.f32.vlgmr.msra.gmra.mxu0 %vm1258_vm1, %v1517_v56  ;;  %v1421_v56 = vld [vmem:[%s5256_s2] sm:$0xff]  ;;  %v3900_v57 = vld [vmem:[%s6156_s21 + $0x178] sm:$0xff] }
 0x40f   : > { %4545 = vmatprep.mubr.msk.f32.mxu0 %vm5068_vm0, %v5067_v3 }
 0x42b   : > { %v1706_v23 = vpop.f32.mrf.mxu1 }
 0x42c   : > { %v1707_v24 = vadd.f32 %v3857_v22, %v1706_v23 }
 0x42d   : > { %v4537_v25 = vpop.f32.mrf.mxu1 }
 0x42e   : > { %4544 = vmatpush3.msra.mxu0 %v1707_v24  ;;  %v3918_v24 = vld [vmem:[%s5245_s16 + $0x178] sm:$0xff]  ;;  %v3917_v25 = vld [vmem:[%s5245_s16 + $0x170] sm:$0xff] }
 0x42f   : > { %4570 = vmatprep.subr.mxu0 %v5067_v3 }
 0x4ce   : > { %v1782_v13 = vpop.f32.mrf.mxu0 }
 0x4cf   : > { %v1786_v14 = vsel %vm978_vm2, %v1782_v13, -inf }
 0x4d0   : > { %v4542_v15 = vpop.f32.mrf.mxu0  ;;  %v1787_v16 = vsel %vm1336_vm3, %v1786_v14, -inf }
 0x4d1   : > { %1788 = vmax.xlane.f32.xlu1 %v1787_v16 }
 0x55a   : > { %v1789_v17 = vpop.xlane.xlu1 %1788 }
 0x55b   : > { %v1790_v18 = vsub.f32 %v1786_v14, %v1789_v17 }
 0x55d   : > { %v1791_v19 = vmul.f32 1.442695, %v1790_v18  ;;  %v3902_v18 = vld [vmem:[%s6158_s6 + $0x2] ss:$0 sm:$0xff] }
 0x55f   : > { %5010 = vpow2.f32 %v1791_v19  ;;  %v3884_v19 = vld [vmem:[%s6159_s10 + $0x2] ss:$0 sm:$0xff] }
 0x56c   : > { %v5011_v20 = vpop.eup %5010 }
 0x56d   : > { %v1793_v21 = vsel %vm1336_vm3, %v5011_v20, 0.0 }
 0x56e   : > { %1794 = vadd.xlane.f32.xlu1 %v1793_v21 }
 0x5f7   : > { %v1795_v30 = vpop.xlane.xlu1 %1794 }
 0x5f8   : > { %5012 = vrcp.f32 %v1795_v30  ;;  %v3912_v30 = vld [vmem:[%s5245_s16 + $0x148] sm:$0xff] }
 0x605   : > { %v5013_v31 = vpop.eup %5012 }
 0x606   : > { %v1797_v32 = vmul.f32 %v5013_v31, %v5011_v20  ;;  %v3911_v31 = vld [vmem:[%s5245_s16 + $0x140] sm:$0xff] }
 0x608   : > { %4546 = vmatmul.mubr.msk.f32.vlgmr.msra.gmra.mxu0 %vm1336_vm3, %v1797_v32  ;;  %v3910_v32 = vld [vmem:[%s5245_s16 + $0x138] sm:$0xff] }
 0x609   : > { %4602 = vmatprep.mubr.msk.f32.mxu0 %vm5068_vm0, %v5067_v3  ;;  %4571 = vmatpush3.msra.mxu0 %v3882_v33  ;;  %v3909_v33 = vld [vmem:[%s5245_s16 + $0x130] sm:$0xff] }
 0x60a   : > { %4572 = vmatprep.subr.mxu0 %v5067_v3 }
 0x60b   : > { %4573 = vmatpush3.msra.mxu0 %v3881_v35  ;;  %v3908_v35 = vld [vmem:[%s5245_s16 + $0x128] sm:$0xff] }
 0x60c   : > { %4574 = vmatprep.subr.mxu0 %v5067_v3 }
 0x60d   : > { %4575 = vmatpush3.msra.mxu0 %v3880_v36  ;;  %v3907_v36 = vld [vmem:[%s5245_s16 + $0x120] sm:$0xff] }
 0x60e   : > { %4576 = vmatprep.subr.mxu0 %v5067_v3 }
 0x60f   : > { %4577 = vmatpush3.msra.mxu0 %v3879_v37  ;;  %v3906_v37 = vld [vmem:[%s5245_s16 + $0x118] sm:$0xff] }
 0x610   : > { %4578 = vmatprep.subr.mxu0 %v5067_v3 }
 0x611   : > { %4579 = vmatpush3.msra.mxu0 %v3878_v38  ;;  %v3905_v38 = vld [vmem:[%s5245_s16 + $0x110] sm:$0xff] }
 0x612   : > { %4580 = vmatprep.subr.mxu0 %v5067_v3 }
 0x613   : > { %4581 = vmatpush3.msra.mxu0 %v3877_v39  ;;  %v3904_v39 = vld [vmem:[%s5245_s16 + $0x108] sm:$0xff] }
 0x614   : > { %4582 = vmatprep.subr.mxu0 %v5067_v3 }
 0x615   : > { %4583 = vmatpush3.msra.mxu0 %v3876_v40  ;;  %v3903_v40 = vld [vmem:[%s5245_s16 + $0x100] sm:$0xff] }
 0x616   : > { %4584 = vmatprep.subr.mxu0 %v5067_v3 }
 0x617   : > { %4585 = vmatpush3.msra.mxu0 %v3875_v41 }
 0x618   : > { %4586 = vmatprep.subr.mxu0 %v5067_v3 }
 0x619   : > { %4587 = vmatpush3.msra.mxu0 %v3874_v42 }
 0x61a   : > { %4588 = vmatprep.subr.mxu0 %v5067_v3 }
 0x61b   : > { %4589 = vmatpush3.msra.mxu0 %v3873_v43 }
 0x61c   : > { %4590 = vmatprep.subr.mxu0 %v5067_v3 }
 0x61d   : > { %4591 = vmatpush3.msra.mxu0 %v3872_v44 }
 0x61e   : > { %4592 = vmatprep.subr.mxu0 %v5067_v3 }
 0x61f   : > { %4593 = vmatpush3.msra.mxu0 %v3871_v45 }
 0x620   : > { %4594 = vmatprep.subr.mxu0 %v5067_v3 }
 0x621   : > { %4595 = vmatpush3.msra.mxu0 %v3870_v46 }
 0x622   : > { %4596 = vmatprep.subr.mxu0 %v5067_v3 }
 0x623   : > { %4597 = vmatpush3.msra.mxu0 %v3869_v47 }
 0x624   : > { %4598 = vmatprep.subr.mxu0 %v5067_v3 }
 0x625   : > { %4599 = vmatpush3.msra.mxu0 %v3868_v48 }
 0x626   : > { %4600 = vmatprep.subr.mxu0 %v5067_v3 }
 0x627   : > { %4601 = vmatpush3.msra.mxu0 %v3867_v49  ;;  %v3920_v49 = vld [vmem:[%s5250_s3 + $0x2] ss:$0 sm:$0xff] }
 0x628   : > { %4603 = vmatmul.mubr.f32.vlgmr.msra.gmra.mxu0 %v5375_v34  ;;  %4640 = vmatprep.subr.mxu0 %v5067_v3 }
 0x629   : > { %4672 = vmatprep.mubr.msk.f32.mxu0 %vm5068_vm0, %v5067_v3  ;;  %4641 = vmatpush3.msra.mxu0 %v3918_v24  ;;  %v3939_v24 = vld [vmem:[%s6157_s19 + $0x1d0] sm:$0xff] }
 0x62a   : > { %4642 = vmatprep.subr.mxu0 %v5067_v3 }
 0x62b   : > { %4643 = vmatpush3.msra.mxu0 %v3917_v25  ;;  %v3938_v25 = vld [vmem:[%s6157_s19 + $0x1c8] sm:$0xff] }
 0x62c   : > { %4644 = vmatprep.subr.mxu0 %v5067_v3 }
 0x62d   : > { %4645 = vmatpush3.msra.mxu0 %v3916_v26  ;;  %v3937_v26 = vld [vmem:[%s6157_s19 + $0x1c0] sm:$0xff] }
 0x62e   : > { %4646 = vmatprep.subr.mxu0 %v5067_v3 }
 0x62f   : > { %4647 = vmatpush3.msra.mxu0 %v3915_v27  ;;  %v3936_v27 = vld [vmem:[%s6157_s19 + $0x1b8] sm:$0xff] }
 0x630   : > { %4648 = vmatprep.subr.mxu0 %v5067_v3 }
 0x631   : > { %4649 = vmatpush3.msra.mxu0 %v3914_v28  ;;  %v3935_v28 = vld [vmem:[%s6157_s19 + $0x1b0] sm:$0xff] }
 0x632   : > { %4650 = vmatprep.subr.mxu0 %v5067_v3 }
 0x633   : > { %4651 = vmatpush3.msra.mxu0 %v3913_v29  ;;  %v3934_v29 = vld [vmem:[%s6157_s19 + $0x1a8] sm:$0xff] }
 0x634   : > { %4652 = vmatprep.subr.mxu0 %v5067_v3 }
 0x635   : > { %4653 = vmatpush3.msra.mxu0 %v3912_v30  ;;  %v3933_v30 = vld [vmem:[%s6157_s19 + $0x1a0] sm:$0xff] }
 0x636   : > { %4654 = vmatprep.subr.mxu0 %v5067_v3 }
 0x637   : > { %4655 = vmatpush3.msra.mxu0 %v3911_v31  ;;  %v3932_v31 = vld [vmem:[%s6157_s19 + $0x198] sm:$0xff] }
 0x638   : > { %4656 = vmatprep.subr.mxu0 %v5067_v3 }
 0x639   : > { %4657 = vmatpush3.msra.mxu0 %v3910_v32  ;;  %v3931_v32 = vld [vmem:[%s6157_s19 + $0x190] sm:$0xff] }
 0x63a   : > { %4658 = vmatprep.subr.mxu0 %v5067_v3 }
 0x63b   : > { %4659 = vmatpush3.msra.mxu0 %v3909_v33  ;;  %v3930_v33 = vld [vmem:[%s6157_s19 + $0x188] sm:$0xff] }
 0x63c   : > { %4660 = vmatprep.subr.mxu0 %v5067_v3 }
 0x63d   : > { %4661 = vmatpush3.msra.mxu0 %v3908_v35  ;;  %v3929_v35 = vld [vmem:[%s6157_s19 + $0x180] sm:$0xff] }
 0x63e   : > { %4662 = vmatprep.subr.mxu0 %v5067_v3 }
 0x63f   : > { %4663 = vmatpush3.msra.mxu0 %v3907_v36  ;;  %v3964_v36 = vld [vmem:[%s6158_s6 + $0x3] ss:$0 sm:$0xff] }
 0x640   : > { %4664 = vmatprep.subr.mxu0 %v5067_v3 }
 0x641   : > { %4665 = vmatpush3.msra.mxu0 %v3906_v37 }
 0x642   : > { %4666 = vmatprep.subr.mxu0 %v5067_v3 }
 0x643   : > { %4667 = vmatpush3.msra.mxu0 %v3905_v38 }
 0x644   : > { %4668 = vmatprep.subr.mxu0 %v5067_v3 }
 0x645   : > { %4669 = vmatpush3.msra.mxu0 %v3904_v39 }
 0x646   : > { %4670 = vmatprep.subr.mxu0 %v5067_v3 }
 0x647   : > { %4671 = vmatpush3.msra.mxu0 %v3903_v40 }
 0x648   : > { %4673 = vmatmul.mubr.f32.vlgmr.msra.gmra.mxu0 %v5375_v34  ;;  %4731 = vmatprep.subr.mxu0 %v5067_v3 }
 0x649   : > { %4763 = vmatprep.mubr.msk.f32.mxu0 %vm5068_vm0, %v5067_v3 }
 0x6c8   : > { %v1867_v51 = vpop.f32.mrf.mxu0 }
 0x6c9   : > { %4557 = vmatmul.mubr.msk.f32.vlgmr.msra.gmra.mxu1 %vm1258_vm1, %v1867_v51 }
 0x6ca   : > { %4560 = vmatpush3.msra.mxu1 %v1424_v50  ;;  %v4547_v54 = vpop.f32.mrf.mxu0  ;;  %4567 = vmatprep.mubr.msk.f32.mxu1 %vm5068_vm0, %v5067_v3 }
 0x6cb   : > { %4561 = vmatprep.subr.mxu1 %v5067_v3  ;;  %v3962_v54 = vld [vmem:[%s6156_s21 + $0x1f8] sm:$0xff] }
 0x6cc   : > { %4562 = vmatpush3.msra.mxu1 %v1423_v53  ;;  %4732 = vmatpush3.msra.mxu0 %v3962_v54  ;;  %v3972_v54 = vld [vmem:[%s5245_s16 + $0x1b8] sm:$0xff] }
 0x6cd   : > { %4563 = vmatprep.subr.mxu1 %v5067_v3  ;;  %4733 = vmatprep.subr.mxu0 %v5067_v3 }
 0x6ce   : > { %4564 = vmatpush3.msra.mxu1 %v1422_v55  ;;  %v3961_v55 = vld [vmem:[%s6156_s21 + $0x1f0] sm:$0xff] }
 0x6cf   : > { %4565 = vmatprep.subr.mxu1 %v5067_v3  ;;  %4734 = vmatpush3.msra.mxu0 %v3961_v55  ;;  %v3971_v55 = vld [vmem:[%s5245_s16 + $0x1b0] sm:$0xff] }
 0x6d0   : > { %4566 = vmatpush3.msra.mxu1 %v1421_v56  ;;  %4735 = vmatprep.subr.mxu0 %v5067_v3 }
 0x6d1   : > { %4568 = vmatmul.mubr.msk.f32.vlgmr.msra.gmra.mxu1 %vm1258_vm1, %v5520_v52  ;;  %4605 = vmatprep.subr.mxu1 %v5067_v3  ;;  %v3896_v52 = vld [vmem:[%s6156_s21 + $0x158] sm:$0xff] }
 0x6d2   : > { %4606 = vmatpush3.msra.mxu1 %v3900_v57  ;;  %4637 = vmatprep.mubr.msk.f32.mxu1 %vm5068_vm0, %v5067_v3 }
 0x6d3   : > { %4607 = vmatprep.subr.mxu1 %v5067_v3 }
 0x6d4   : > { %4608 = vmatpush3.msra.mxu1 %v3899_v58 }
 0x6d5   : > { %4609 = vmatprep.subr.mxu1 %v5067_v3 }
 0x6d6   : > { %4610 = vmatpush3.msra.mxu1 %v3898_v59  ;;  %v3927_v59 = vld [vmem:[%s5256_s2 + $0x58] sm:$0xff] }
 0x6d7   : > { %4611 = vmatprep.subr.mxu1 %v5067_v3 }
 0x6d8   : > { %4612 = vmatpush3.msra.mxu1 %v3897_v62  ;;  %v3926_v62 = vld [vmem:[%s5256_s2 + $0x50] sm:$0xff] }
 0x6d9   : > { %4613 = vmatprep.subr.mxu1 %v5067_v3 }
 0x6da   : > { %4614 = vmatpush3.msra.mxu1 %v3896_v52  ;;  %v3925_v52 = vld [vmem:[%s5256_s2 + $0x48] sm:$0xff] }
 0x6db   : > { %4615 = vmatprep.subr.mxu1 %v5067_v3 }
 0x6dc   : > { %4616 = vmatpush3.msra.mxu1 %v3895_v63  ;;  %v3924_v63 = vld [vmem:[%s5256_s2 + $0x40] sm:$0xff] }
 0x6dd   : > { %4617 = vmatprep.subr.mxu1 %v5067_v3 }
 0x6de   : > { %4618 = vmatpush3.msra.mxu1 %v3894_v0  ;;  %v3960_v0 = vld [vmem:[%s6156_s21 + $0x1e8] sm:$0xff] }
 0x6df   : > { %4619 = vmatprep.subr.mxu1 %v5067_v3  ;;  %4736 = vmatpush3.msra.mxu0 %v3960_v0 }
 0x6e0   : > { %4620 = vmatpush3.msra.mxu1 %v3893_v1  ;;  %4737 = vmatprep.subr.mxu0 %v5067_v3  ;;  %v3959_v1 = vld [vmem:[%s6156_s21 + $0x1e0] sm:$0xff] }
 0x6e1   : > { %4621 = vmatprep.subr.mxu1 %v5067_v3  ;;  %4738 = vmatpush3.msra.mxu0 %v3959_v1 }
 0x6e2   : > { %4622 = vmatpush3.msra.mxu1 %v3892_v2  ;;  %4739 = vmatprep.subr.mxu0 %v5067_v3  ;;  %v3958_v2 = vld [vmem:[%s6156_s21 + $0x1d8] sm:$0xff] }
 0x6e3   : > { %4623 = vmatprep.subr.mxu1 %v5067_v3  ;;  %4740 = vmatpush3.msra.mxu0 %v3958_v2 }
 0x6e4   : > { %4624 = vmatpush3.msra.mxu1 %v3891_v4  ;;  %4741 = vmatprep.subr.mxu0 %v5067_v3  ;;  %v3957_v4 = vld [vmem:[%s6156_s21 + $0x1d0] sm:$0xff] }
 0x6e5   : > { %4625 = vmatprep.subr.mxu1 %v5067_v3  ;;  %4742 = vmatpush3.msra.mxu0 %v3957_v4 }
 0x6e6   : > { %4626 = vmatpush3.msra.mxu1 %v3890_v5  ;;  %4743 = vmatprep.subr.mxu0 %v5067_v3  ;;  %v3956_v5 = vld [vmem:[%s6156_s21 + $0x1c8] sm:$0xff] }
 0x6e7   : > { %4627 = vmatprep.subr.mxu1 %v5067_v3  ;;  %4744 = vmatpush3.msra.mxu0 %v3956_v5 }
 0x6e8   : > { %4628 = vmatpush3.msra.mxu1 %v3889_v6  ;;  %v2113_v11 = vpop.f32.mrf.mxu0  ;;  %4745 = vmatprep.subr.mxu0 %v5067_v3  ;;  %v3955_v6 = vld [vmem:[%s6156_s21 + $0x1c0] sm:$0xff] }
 0x6e9   : > { %4629 = vmatprep.subr.mxu1 %v5067_v3  ;;  %v2114_v22 = vadd.f32 %v3884_v19, %v2113_v11  ;;  %4746 = vmatpush3.msra.mxu0 %v3955_v6  ;;  %v3950_v11 = vld [vmem:[%s6156_s21 + $0x198] sm:$0xff]  ;;  %v3943_v19 = vld [vmem:[%s6157_s19 + $0x1f0] sm:$0xff] }
 0x6ea   : > { %4630 = vmatpush3.msra.mxu1 %v3888_v7  ;;  %v4604_v12 = vpop.f32.mrf.mxu0  ;;  %4747 = vmatprep.subr.mxu0 %v5067_v3  ;;  %v3954_v7 = vld [vmem:[%s6156_s21 + $0x1b8] sm:$0xff] }
 0x6eb   : > { %4631 = vmatprep.subr.mxu1 %v5067_v3  ;;  %4748 = vmatpush3.msra.mxu0 %v3954_v7  ;;  %v3949_v12 = vld [vmem:[%s6156_s21 + $0x190] sm:$0xff] }
 0x6ec   : > { %4632 = vmatpush3.msra.mxu1 %v3887_v8  ;;  %4749 = vmatprep.subr.mxu0 %v5067_v3  ;;  %v3953_v8 = vld [vmem:[%s6156_s21 + $0x1b0] sm:$0xff] }
 0x6ed   : > { %4633 = vmatprep.subr.mxu1 %v5067_v3  ;;  %4750 = vmatpush3.msra.mxu0 %v3953_v8 }
 0x6ee   : > { %4634 = vmatpush3.msra.mxu1 %v3886_v9  ;;  %4751 = vmatprep.subr.mxu0 %v5067_v3  ;;  %v3952_v9 = vld [vmem:[%s6156_s21 + $0x1a8] sm:$0xff] }
 0x6ef   : > { %4635 = vmatprep.subr.mxu1 %v5067_v3  ;;  %4752 = vmatpush3.msra.mxu0 %v3952_v9  ;;  %v3982_v9 = vld [vmem:[%s5250_s3 + $0x3] ss:$0 sm:$0xff]  ;;  %s6161_s3 = sld [smem:[#allocation22_spill]] }
 0x6f0   : > { %4636 = vmatpush3.msra.mxu1 %v3885_v10  ;;  %4753 = vmatprep.subr.mxu0 %v5067_v3  ;;  %v3951_v10 = vld [vmem:[%s6156_s21 + $0x1a0] sm:$0xff] }
 0x6f1   : > { %4638 = vmatmul.mubr.f32.vlgmr.msra.gmra.mxu1 %v5375_v34  ;;  %4675 = vmatprep.subr.mxu1 %v5067_v3 }
 0x6f2   : > { %4677 = vmatprep.mubr.msk.f32.mxu1 %vm5068_vm0, %v5067_v3  ;;  %4754 = vmatpush3.msra.mxu0 %v3951_v10 }
 0x6f3   : > { %4755 = vmatprep.subr.mxu0 %v5067_v3 }
 0x6f4   : > { %4756 = vmatpush3.msra.mxu0 %v3950_v11 }
 0x6f5   : > { %4757 = vmatprep.subr.mxu0 %v5067_v3 }
 0x6f6   : > { %4758 = vmatpush3.msra.mxu0 %v3949_v12  ;;  %v3988_v12 = vld [vmem:[%s5256_s2 + $0x70] sm:$0xff] }
 0x6f7   : > { %4759 = vmatprep.subr.mxu0 %v5067_v3 }
 0x708   : > { %v2303_v50 = vpop.f32.mrf.mxu0 }
 0x709   : > { %v2304_v51 = vadd.f32 %v3920_v49, %v2303_v50  ;;  %v3976_v49 = vld [vmem:[%s5245_s16 + $0x1d8] sm:$0xff]  ;;  %v3975_v50 = vld [vmem:[%s5245_s16 + $0x1d0] sm:$0xff] }
 0x70a   : > { %v4674_v53 = vpop.f32.mrf.mxu0 }
 0x70b   : > { %v3973_v53 = vld [vmem:[%s5245_s16 + $0x1c0] sm:$0xff] }
 0x789   : > { %v1945_v13 = vpop.f32.mrf.mxu1 }
 0x78b   : > { %v4558_v14 = vpop.f32.mrf.mxu1 }
 0x78c   : > { %v3947_v14 = vld [vmem:[%s6156_s21 + $0x180] sm:$0xff] }
 0x791   : > { %v2018_v15 = vpop.f32.mrf.mxu1 }
 0x792   : > { %v5664_v16 = vadd.f32 %v2018_v15, %v1945_v13  ;;  %v3948_v13 = vld [vmem:[%s6156_s21 + $0x188] sm:$0xff]  ;;  %v5757_v15 = vld [vmem:[#allocation2] sm:$0xff] }
 0x793   : > { %v4569_v17 = vpop.f32.mrf.mxu1  ;;  %4760 = vmatpush3.msra.mxu0 %v3948_v13  ;;  %v3987_v13 = vld [vmem:[%s5256_s2 + $0x68] sm:$0xff] }
 0x794   : > { %4761 = vmatprep.subr.mxu0 %v5067_v3  ;;  %v3944_v17 = vld [vmem:[%s6157_s19 + $0x1f8] sm:$0xff] }
 0x795   : > { %4762 = vmatpush3.msra.mxu0 %v3947_v14 }
 0x796   : > { %4764 = vmatmul.mubr.f32.vlgmr.msra.gmra.mxu0 %v5757_v15  ;;  %4801 = vmatprep.subr.mxu0 %v5067_v3 }
 0x797   : > { %4803 = vmatprep.mubr.msk.f32.mxu0 %vm5068_vm0, %v5067_v3 }
 0x7b1   : > { %v2208_v20 = vpop.f32.mrf.mxu1 }
 0x7b2   : > { %v2209_v21 = vadd.f32 %v3902_v18, %v2208_v20 }
 0x7b3   : > { %v4639_v23 = vpop.f32.mrf.mxu1 }
 0x7b4   : > { %4676 = vmatpush3.xpose.msk.msra.mxu1 %vm1258_vm1, %v2209_v21  ;;  %v3942_v21 = vld [vmem:[%s6157_s19 + $0x1e8] sm:$0xff]  ;;  %v3940_v23 = vld [vmem:[%s6157_s19 + $0x1d8] sm:$0xff] }
 0x7b5   : > { %4680 = vmatprep.subr.mxu1 %v5067_v3 }
 0x7b7   : > { %4678 = vmatmul.mubr.msk.f32.vlgmr.msra.gmra.mxu1 %vm1258_vm1, %v2114_v22  ;;  %v3941_v22 = vld [vmem:[%s6157_s19 + $0x1e0] sm:$0xff] }
 0x7b8   : > { %4682 = vmatprep.mubr.msk.f32.mxu1 %vm5068_vm0, %v5067_v3  ;;  %4681 = vmatpush3.msra.mxu1 %v2304_v51  ;;  %v3974_v51 = vld [vmem:[%s5245_s16 + $0x1c8] sm:$0xff] }
 0x7b9   : > { %4685 = vmatprep.subr.mxu1 %v5067_v3 }
 0x856   : > { %v2733_v37 = vpop.f32.mrf.mxu0 }
 0x857   : > { %v2734_v38 = vadd.f32 %v3964_v36, %v2733_v37  ;;  %v3083_v36 = vld [vmem:[%s5265_s27 + $0x10] sm:$0xff]  ;;  %v3082_v37 = vld [vmem:[%s5265_s27 + $0x8] sm:$0xff] }
 0x858   : > { %v4765_v39 = vpop.f32.mrf.mxu0 }
 0x859   : > { %4802 = vmatpush3.xpose.msk.msra.mxu0 %vm1258_vm1, %v2734_v38  ;;  %v3081_v38 = vld [vmem:[%s5265_s27] sm:$0xff] }
 0x85a   : > { %4806 = vmatprep.subr.mxu0 %v5067_v3 }
 0x877   : > { %v2379_v41 = vpop.f32.mrf.mxu1 }
 0x878   : > { %v2383_v42 = vsel %vm978_vm2, %v2379_v41, -inf }
 0x879   : > { %v4679_v43 = vpop.f32.mrf.mxu1  ;;  %v2384_v44 = vsel %vm1336_vm3, %v2383_v42, -inf }
 0x87a   : > { %2385 = vmax.xlane.f32.xlu0 %v2384_v44  ;;  %v3946_v43 = vld [vmem:[%s6159_s10 + $0x3] ss:$0 sm:$0xff] }
 0x903   : > { %v2386_v45 = vpop.xlane.xlu0 %2385 }
 0x904   : > { %v2387_v46 = vsub.f32 %v2383_v42, %v2386_v45 }
 0x906   : > { %v2388_v47 = vmul.f32 1.442695, %v2387_v46 }
 0x908   : > { %5014 = vpow2.f32 %v2388_v47  ;;  %v3980_v47 = vld [vmem:[%s5245_s16 + $0x1f8] sm:$0xff] }
 0x915   : > { %v5015_v34 = vpop.eup %5014 }
 0x916   : > { %v2390_v48 = vsel %vm1336_vm3, %v5015_v34, 0.0 }
 0x917   : > { %2391 = vadd.xlane.f32.xlu1 %v2390_v48  ;;  %v3977_v48 = vld [vmem:[%s5245_s16 + $0x1e0] sm:$0xff] }
 0x9a0   : > { %v2392_v56 = vpop.xlane.xlu1 %2391 }
 0x9a1   : > { %5016 = vrcp.f32 %v2392_v56  ;;  %v3970_v56 = vld [vmem:[%s5245_s16 + $0x1a8] sm:$0xff] }
 0x9ae   : > { %v5017_v57 = vpop.eup %5016 }
 0x9af   : > { %v2394_v58 = vmul.f32 %v5017_v57, %v5015_v34  ;;  %v3979_v34 = vld [vmem:[%s5245_s16 + $0x1f0] sm:$0xff]  ;;  %v3969_v57 = vld [vmem:[%s5245_s16 + $0x1a0] sm:$0xff] }
 0x9b1   : > { %4683 = vmatmul.mubr.msk.f32.vlgmr.msra.gmra.mxu1 %vm1336_vm3, %v2394_v58  ;;  %v3968_v58 = vld [vmem:[%s5245_s16 + $0x198] sm:$0xff] }
 0x9b2   : > { %4686 = vmatpush3.msra.mxu1 %v3927_v59  ;;  %4693 = vmatprep.mubr.msk.f32.mxu1 %vm5068_vm0, %v5067_v3  ;;  %v3967_v59 = vld [vmem:[%s5245_s16 + $0x190] sm:$0xff] }
 0x9b3   : > { %4687 = vmatprep.subr.mxu1 %v5067_v3 }
 0x9b4   : > { %4688 = vmatpush3.msra.mxu1 %v3926_v62  ;;  %v3966_v62 = vld [vmem:[%s5245_s16 + $0x188] sm:$0xff] }
 0x9b5   : > { %4689 = vmatprep.subr.mxu1 %v5067_v3 }
 0x9b6   : > { %4690 = vmatpush3.msra.mxu1 %v3925_v52  ;;  %v3965_v52 = vld [vmem:[%s5245_s16 + $0x180] sm:$0xff] }
 0x9b7   : > { %4691 = vmatprep.subr.mxu1 %v5067_v3 }
 0x9b8   : > { %4692 = vmatpush3.msra.mxu1 %v3924_v63 }
 0x9b9   : > { %4696 = vmatprep.subr.mxu1 %v5067_v3 }
 0xa71   : > { %v2464_v18 = vpop.f32.mrf.mxu1 }
 0xa72   : > { %4694 = vmatmul.mubr.msk.f32.vlgmr.msra.gmra.mxu1 %vm1258_vm1, %v2464_v18 }
 0xa73   : > { %4697 = vmatpush3.msra.mxu1 %v3944_v17  ;;  %v4684_v20 = vpop.f32.mrf.mxu1  ;;  %4728 = vmatprep.mubr.msk.f32.mxu1 %vm5068_vm0, %v5067_v3 }
 0xa74   : > { %4698 = vmatprep.subr.mxu1 %v5067_v3  ;;  %v3096_v20 = vld [vmem:[%s5265_s27 + $0x78] sm:$0xff] }
 0xa75   : > { %4699 = vmatpush3.msra.mxu1 %v3943_v19  ;;  %v3986_v19 = vld [vmem:[%s5256_s2 + $0x60] sm:$0xff]  ;;  %s6160_s2 = scalar_lea.vmem %s6086_s8, %s5215_s0 }
 0xa76   : > { %4700 = vmatprep.subr.mxu1 %v5067_v3 }
 0xa77   : > { %4701 = vmatpush3.msra.mxu1 %v3942_v21  ;;  %v3095_v21 = vld [vmem:[%s5265_s27 + $0x70] sm:$0xff] }
 0xa78   : > { %4702 = vmatprep.subr.mxu1 %v5067_v3 }
 0xa79   : > { %4703 = vmatpush3.msra.mxu1 %v3941_v22  ;;  %v3094_v22 = vld [vmem:[%s5265_s27 + $0x68] sm:$0xff] }
 0xa7a   : > { %4704 = vmatprep.subr.mxu1 %v5067_v3 }
 0xa7b   : > { %4705 = vmatpush3.msra.mxu1 %v3940_v23  ;;  %v3093_v23 = vld [vmem:[%s5265_s27 + $0x60] sm:$0xff] }
 0xa7c   : > { %4706 = vmatprep.subr.mxu1 %v5067_v3 }
 0xa7d   : > { %4707 = vmatpush3.msra.mxu1 %v3939_v24  ;;  %v3092_v24 = vld [vmem:[%s5265_s27 + $0x58] sm:$0xff] }
 0xa7e   : > { %4708 = vmatprep.subr.mxu1 %v5067_v3 }
 0xa7f   : > { %4709 = vmatpush3.msra.mxu1 %v3938_v25  ;;  %v3091_v25 = vld [vmem:[%s5265_s27 + $0x50] sm:$0xff] }
 0xa80   : > { %4710 = vmatprep.subr.mxu1 %v5067_v3 }
 0xa81   : > { %4711 = vmatpush3.msra.mxu1 %v3937_v26  ;;  %v3090_v26 = vld [vmem:[%s5265_s27 + $0x48] sm:$0xff] }
 0xa82   : > { %4712 = vmatprep.subr.mxu1 %v5067_v3 }
 0xa83   : > { %4713 = vmatpush3.msra.mxu1 %v3936_v27  ;;  %v3089_v27 = vld [vmem:[%s5265_s27 + $0x40] sm:$0xff] }
 0xa84   : > { %4714 = vmatprep.subr.mxu1 %v5067_v3 }
 0xa85   : > { %4715 = vmatpush3.msra.mxu1 %v3935_v28  ;;  %v3088_v28 = vld [vmem:[%s5265_s27 + $0x38] sm:$0xff] }
 0xa86   : > { %4716 = vmatprep.subr.mxu1 %v5067_v3 }
 0xa87   : > { %4717 = vmatpush3.msra.mxu1 %v3934_v29  ;;  %v3087_v29 = vld [vmem:[%s5265_s27 + $0x30] sm:$0xff] }
 0xa88   : > { %4718 = vmatprep.subr.mxu1 %v5067_v3 }
 0xa89   : > { %4719 = vmatpush3.msra.mxu1 %v3933_v30  ;;  %v3086_v30 = vld [vmem:[%s5265_s27 + $0x28] sm:$0xff] }
 0xa8a   : > { %4720 = vmatprep.subr.mxu1 %v5067_v3 }
 0xa8b   : > { %4721 = vmatpush3.msra.mxu1 %v3932_v31  ;;  %v3085_v31 = vld [vmem:[%s5265_s27 + $0x20] sm:$0xff] }
 0xa8c   : > { %4722 = vmatprep.subr.mxu1 %v5067_v3 }
 0xa8d   : > { %4723 = vmatpush3.msra.mxu1 %v3931_v32 }
 0xa8e   : > { %4724 = vmatprep.subr.mxu1 %v5067_v3 }
 0xa8f   : > { %4725 = vmatpush3.msra.mxu1 %v3930_v33 }
 0xa90   : > { %4726 = vmatprep.subr.mxu1 %v5067_v3 }
 0xa91   : > { %4727 = vmatpush3.msra.mxu1 %v3929_v35  ;;  %v3084_v35 = vld [vmem:[%s5265_s27 + $0x18] sm:$0xff]  ;;  %s6162_s27 = scalar_lea.vmem %s6161_s3, %s5215_s0 }
 0xa92   : > { %4729 = vmatmul.mubr.f32.vlgmr.msra.gmra.mxu1 %v5757_v15  ;;  %4766 = vmatprep.subr.mxu1 %v5067_v3 }
 0xa93   : > { %4798 = vmatprep.mubr.msk.f32.mxu1 %vm5068_vm0, %v5067_v3  ;;  %4767 = vmatpush3.msra.mxu1 %v3980_v47 }
 0xa94   : > { %4768 = vmatprep.subr.mxu1 %v5067_v3 }
 0xa95   : > { %4769 = vmatpush3.msra.mxu1 %v3979_v34 }
 0xa96   : > { %4770 = vmatprep.subr.mxu1 %v5067_v3 }
 0xb32   : > { %v2542_v40 = vpop.f32.mrf.mxu1 }
 0xb33   : > { %v5805_v41 = vadd.f32 %v2542_v40, %v5664_v16  ;;  %v3978_v16 = vld [vmem:[%s5245_s16 + $0x1e8] sm:$0xff]  ;;  %v3991_v40 = vld [vmem:[%s6160_s2] ss:$0 sm:$0xff] }
 0xb34   : > { %v4695_v42 = vpop.f32.mrf.mxu1  ;;  %4771 = vmatpush3.msra.mxu1 %v3978_v16 }
 0xb35   : > { %4772 = vmatprep.subr.mxu1 %v5067_v3 }
 0xb36   : > { %4773 = vmatpush3.msra.mxu1 %v3977_v48 }
 0xb37   : > { %4774 = vmatprep.subr.mxu1 %v5067_v3 }
 0xb38   : > { %4775 = vmatpush3.msra.mxu1 %v3976_v49  ;;  %v3217_v49 = vld [vmem:[%s5282_s22 + $0x70] sm:$0xff] }
 0xb39   : > { %4776 = vmatprep.subr.mxu1 %v5067_v3 }
 0xb3a   : > { %4777 = vmatpush3.msra.mxu1 %v3975_v50  ;;  %v3216_v50 = vld [vmem:[%s5282_s22 + $0x68] sm:$0xff] }
 0xb3b   : > { %4778 = vmatprep.subr.mxu1 %v5067_v3 }
 0xb3c   : > { %4779 = vmatpush3.msra.mxu1 %v3974_v51  ;;  %v3215_v51 = vld [vmem:[%s5282_s22 + $0x60] sm:$0xff] }
 0xb3d   : > { %4780 = vmatprep.subr.mxu1 %v5067_v3 }
 0xb3e   : > { %4781 = vmatpush3.msra.mxu1 %v3973_v53 }
 0xb3f   : > { %4782 = vmatprep.subr.mxu1 %v5067_v3 }
 0xb40   : > { %4783 = vmatpush3.msra.mxu1 %v3972_v54 }
 0xb41   : > { %4784 = vmatprep.subr.mxu1 %v5067_v3 }
 0xb42   : > { %4785 = vmatpush3.msra.mxu1 %v3971_v55 }
 0xb43   : > { %4786 = vmatprep.subr.mxu1 %v5067_v3 }
 0xb44   : > { %4787 = vmatpush3.msra.mxu1 %v3970_v56  ;;  %v3214_v56 = vld [vmem:[%s5282_s22 + $0x58] sm:$0xff] }
 0xb45   : > { %4788 = vmatprep.subr.mxu1 %v5067_v3 }
 0xb46   : > { %4789 = vmatpush3.msra.mxu1 %v3969_v57  ;;  %v3213_v57 = vld [vmem:[%s5282_s22 + $0x50] sm:$0xff] }
 0xb47   : > { %4790 = vmatprep.subr.mxu1 %v5067_v3 }
 0xb48   : > { %4791 = vmatpush3.msra.mxu1 %v3968_v58  ;;  %v3212_v58 = vld [vmem:[%s5282_s22 + $0x48] sm:$0xff] }
 0xb49   : > { %4792 = vmatprep.subr.mxu1 %v5067_v3 }
 0xb4a   : > { %4793 = vmatpush3.msra.mxu1 %v3967_v59  ;;  %v3211_v59 = vld [vmem:[%s5282_s22 + $0x40] sm:$0xff] }
 0xb4b   : > { %4794 = vmatprep.subr.mxu1 %v5067_v3 }
 0xb4c   : > { %4795 = vmatpush3.msra.mxu1 %v3966_v62  ;;  %v3210_v62 = vld [vmem:[%s5282_s22 + $0x38] sm:$0xff] }
 0xb4d   : > { %4796 = vmatprep.subr.mxu1 %v5067_v3 }
 0xb4e   : > { %4797 = vmatpush3.msra.mxu1 %v3965_v52  ;;  %v3209_v52 = vld [vmem:[%s5282_s22 + $0x30] sm:$0xff] }
 0xb4f   : > { %4799 = vmatmul.mubr.f32.vlgmr.msra.gmra.mxu1 %v5757_v15  ;;  %4811 = vmatprep.subr.mxu1 %v5067_v3 }
 0xb50   : > { %4819 = vmatprep.mubr.msk.f32.mxu1 %vm5068_vm0, %v5067_v3  ;;  %4812 = vmatpush3.msra.mxu1 %v3989_v61  ;;  %v3305_v61 = vld [vmem:[%s5291_s28 + $0x40] sm:$0xff] }
 0xb51   : > { %4813 = vmatprep.subr.mxu1 %v5067_v3 }
 0xb52   : > { %v2638_v44 = vpop.f32.mrf.mxu1  ;;  %4814 = vmatpush3.msra.mxu1 %v3988_v12  ;;  %v3304_v12 = vld [vmem:[%s5291_s28 + $0x38] sm:$0xff] }
 0xb53   : > { %v2639_v45 = vadd.f32 %v3946_v43, %v2638_v44  ;;  %4815 = vmatprep.subr.mxu1 %v5067_v3 }
 0xb54   : > { %v4730_v46 = vpop.f32.mrf.mxu1  ;;  %4816 = vmatpush3.msra.mxu1 %v3987_v13  ;;  %v3303_v13 = vld [vmem:[%s5291_s28 + $0x30] sm:$0xff] }
 0xb55   : > { %4804 = vmatmul.mubr.msk.f32.vlgmr.msra.gmra.mxu0 %vm1258_vm1, %v2639_v45  ;;  %4817 = vmatprep.subr.mxu1 %v5067_v3  ;;  %v3992_v46 = vld [vmem:[%s6162_s27] ss:$0 sm:$0xff]  ;;  %s6172_s27 = sld [smem:[#allocation29_spill]] (!%p3999_p8) }
 0xb56   : > { %4808 = vmatprep.mubr.msk.f32.mxu0 %vm5068_vm0, %v5067_v3  ;;  %4818 = vmatpush3.msra.mxu1 %v3986_v19 }
 0xb57   : > { %4857 = vmatprep.subr.mxu1 %v5067_v3 }
 0xc0f   : > { %v2828_v10 = vpop.f32.mrf.mxu1 }
 0xc10   : > { %v2829_v11 = vadd.f32 %v3982_v9, %v2828_v10  ;;  %v3309_v9 = vld [vmem:[%s5291_s28 + $0x60] sm:$0xff]  ;;  %v3308_v10 = vld [vmem:[%s5291_s28 + $0x58] sm:$0xff] }
 0xc11   : > { %v4800_v60 = vpop.f32.mrf.mxu1 }
 0xc12   : > { %4807 = vmatpush3.msra.mxu0 %v2829_v11  ;;  %v3307_v11 = vld [vmem:[%s5291_s28 + $0x50] sm:$0xff]  ;;  %v3306_v60 = vld [vmem:[%s5291_s28 + $0x48] sm:$0xff] }
 0xc13   : > { %4822 = vmatprep.subr.mxu0 %v5067_v3 }
 0xc15   : > { %v2904_v63 = vpop.f32.mrf.mxu0 }
 0xc16   : > { %v2908_v0 = vsel %vm978_vm2, %v2904_v63, -inf  ;;  %v3208_v63 = vld [vmem:[%s5282_s22 + $0x28] sm:$0xff] }
 0xc17   : > { %v4805_v1 = vpop.f32.mrf.mxu0  ;;  %v2909_v2 = vsel %vm1336_vm3, %v2908_v0, -inf }
 0xc18   : > { %2910 = vmax.xlane.f32.xlu0 %v2909_v2  ;;  %v3206_v1 = vld [vmem:[%s5282_s22 + $0x18] sm:$0xff]  ;;  %v3205_v2 = vld [vmem:[%s5282_s22 + $0x10] sm:$0xff] }
 0xca1   : > { %v2911_v4 = vpop.xlane.xlu0 %2910 }
 0xca2   : > { %v2912_v5 = vsub.f32 %v2908_v0, %v2911_v4  ;;  %v3207_v0 = vld [vmem:[%s5282_s22 + $0x20] sm:$0xff]  ;;  %v3204_v4 = vld [vmem:[%s5282_s22 + $0x8] sm:$0xff] }
 0xca4   : > { %v2913_v6 = vmul.f32 1.442695, %v2912_v5  ;;  %v3203_v5 = vld [vmem:[%s5282_s22] sm:$0xff] }
 0xca6   : > { %5018 = vpow2.f32 %v2913_v6  ;;  %v3312_v6 = vld [vmem:[%s5291_s28 + $0x78] sm:$0xff] }
 0xcb3   : > { %v5019_v7 = vpop.eup %5018 }
 0xcb4   : > { %v2915_v8 = vsel %vm1336_vm3, %v5019_v7, 0.0 }
 0xcb5   : > { %2916 = vadd.xlane.f32.xlu1 %v2915_v8  ;;  %v3310_v8 = vld [vmem:[%s5291_s28 + $0x68] sm:$0xff] }
 0xd3e   : > { %v2917_v14 = vpop.xlane.xlu1 %2916 }
 0xd3f   : > { %5020 = vrcp.f32 %v2917_v14  ;;  %v3302_v14 = vld [vmem:[%s5291_s28 + $0x28] sm:$0xff] }
 0xd4c   : > { %v5021_v17 = vpop.eup %5020 }
 0xd4d   : > { %v2919_v18 = vmul.f32 %v5021_v17, %v5019_v7  ;;  %v3311_v7 = vld [vmem:[%s5291_s28 + $0x70] sm:$0xff]  ;;  %v3301_v17 = vld [vmem:[%s5291_s28 + $0x20] sm:$0xff] }
 0xd4f   : > { %4809 = vmatmul.mubr.msk.f32.vlgmr.msra.gmra.mxu0 %vm1336_vm3, %v2919_v18  ;;  %v3300_v18 = vld [vmem:[%s5291_s28 + $0x18] sm:$0xff] }
 0xd50   : > { %4854 = vmatprep.mubr.msk.f32.mxu0 %vm5068_vm0, %v5067_v3  ;;  %4823 = vmatpush3.msra.mxu0 %v3096_v20 }
 0xd51   : > { %4824 = vmatprep.subr.mxu0 %v5067_v3 }
 0xd52   : > { %4825 = vmatpush3.msra.mxu0 %v3095_v21 }
 0xd53   : > { %4826 = vmatprep.subr.mxu0 %v5067_v3 }
 0xd54   : > { %4827 = vmatpush3.msra.mxu0 %v3094_v22 }
 0xd55   : > { %4828 = vmatprep.subr.mxu0 %v5067_v3 }
 0xd56   : > { %4829 = vmatpush3.msra.mxu0 %v3093_v23  ;;  %v3993_v23 = vld [vmem:[%s6164_s20] ss:$0 sm:$0xff] }
 0xd57   : > { %4830 = vmatprep.subr.mxu0 %v5067_v3 }
 0xd58   : > { %4831 = vmatpush3.msra.mxu0 %v3092_v24 }
 0xd59   : > { %4832 = vmatprep.subr.mxu0 %v5067_v3 }
 0xd5a   : > { %4833 = vmatpush3.msra.mxu0 %v3091_v25  ;;  %v3994_v25 = vld [vmem:[%s6166_s5] ss:$0 sm:$0xff] }
 0xd5b   : > { %4834 = vmatprep.subr.mxu0 %v5067_v3 }
 0xd5c   : > { %4835 = vmatpush3.msra.mxu0 %v3090_v26 }
 0xd5d   : > { %4836 = vmatprep.subr.mxu0 %v5067_v3 }
 0xd5e   : > { %4837 = vmatpush3.msra.mxu0 %v3089_v27 }
 0xd5f   : > { %4838 = vmatprep.subr.mxu0 %v5067_v3 }
 0xd60   : > { %4839 = vmatpush3.msra.mxu0 %v3088_v28  ;;  %v3299_v28 = vld [vmem:[%s5291_s28 + $0x10] sm:$0xff] }
 0xd61   : > { %4840 = vmatprep.subr.mxu0 %v5067_v3 }
 0xd62   : > { %4841 = vmatpush3.msra.mxu0 %v3087_v29  ;;  %v3298_v29 = vld [vmem:[%s5291_s28 + $0x8] sm:$0xff] }
 0xd63   : > { %4842 = vmatprep.subr.mxu0 %v5067_v3 }
 0xd64   : > { %4843 = vmatpush3.msra.mxu0 %v3086_v30  ;;  %v3297_v30 = vld [vmem:[%s5291_s28] sm:$0xff] }
 0xd65   : > { %4844 = vmatprep.subr.mxu0 %v5067_v3 }
 0xd66   : > { %4845 = vmatpush3.msra.mxu0 %v3085_v31  ;;  %v3995_v31 = vld [vmem:[%s6167_s9] ss:$0 sm:$0xff] }
 0xd67   : > { %4846 = vmatprep.subr.mxu0 %v5067_v3 }
 0xd68   : > { %4847 = vmatpush3.msra.mxu0 %v3084_v35 }
 0xd69   : > { %4848 = vmatprep.subr.mxu0 %v5067_v3 }
 0xd6a   : > { %4849 = vmatpush3.msra.mxu0 %v3083_v36 }
 0xd6b   : > { %4850 = vmatprep.subr.mxu0 %v5067_v3 }
 0xd6c   : > { %4851 = vmatpush3.msra.mxu0 %v3082_v37  ;;  %v3996_v37 = vld [vmem:[%s956_s26] ss:$0 sm:$0xff] }
 0xd6d   : > { %4852 = vmatprep.subr.mxu0 %v5067_v3 }
 0xd6e   : > { %4853 = vmatpush3.msra.mxu0 %v3081_v38 }
 0xd6f   : > { %4892 = vmatprep.subr.mxu0 %v5067_v3 }
 0xe0f   : > { %v2989_v32 = vpop.f32.mrf.mxu0 }
 0xe10   : > { %4820 = vmatmul.mubr.msk.f32.vlgmr.msra.gmra.mxu1 %vm1258_vm1, %v2989_v32 }
 0xe11   : > { %v4810_v33 = vpop.f32.mrf.mxu0  ;;  %4889 = vmatprep.mubr.msk.f32.mxu1 %vm5068_vm0, %v5067_v3 }
 0xed0   : > { %v3067_v39 = vpop.f32.mrf.mxu1 }
 0xed1   : > { %v3071_v42 = vadd.f32 %v3067_v39, %v5805_v41  ;;  %v3218_v41 = vld [vmem:[%s5282_s22 + $0x78] sm:$0xff]  ;;  %s6173_s22 = smov (!%p3999_p8), %s6172_s27 }
 0xed2   : > { %v4821_v43 = vpop.f32.mrf.mxu1  ;;  %4858 = vmatpush3.msra.mxu1 %v3218_v41 }
 0xed3   : > { %v3079_v44 = vadd.f32 %v3991_v40, %v3071_v42  ;;  %4859 = vmatprep.subr.mxu1 %v5067_v3 }
 0xed4   : > { %4860 = vmatpush3.msra.mxu1 %v3217_v49  ;;  %v3998_v49 = vld [vmem:[%s962_s11] ss:$0 sm:$0xff] }
 0xed5   : > { %v3080_v45 = vmax.f32 %v3079_v44, 0.0  ;;  %4861 = vmatprep.subr.mxu1 %v5067_v3 }
 0xed6   : > { %4862 = vmatpush3.msra.mxu1 %v3216_v50 }
 0xed7   : > { %4855 = vmatmul.mubr.f32.vlgmr.msra.gmra.mxu0 %v3080_v45  ;;  %4863 = vmatprep.subr.mxu1 %v5067_v3 }
 0xed8   : > { %4924 = vmatprep.mubr.msk.f32.mxu0 %vm5068_vm0, %v5067_v3  ;;  %4864 = vmatpush3.msra.mxu1 %v3215_v51 }
 0xed9   : > { %4865 = vmatprep.subr.mxu1 %v5067_v3  ;;  %4893 = vmatpush3.msra.mxu0 %v3312_v6 }
 0xeda   : > { %4866 = vmatpush3.msra.mxu1 %v3214_v56  ;;  %4894 = vmatprep.subr.mxu0 %v5067_v3 }
 0xedb   : > { %4867 = vmatprep.subr.mxu1 %v5067_v3  ;;  %4895 = vmatpush3.msra.mxu0 %v3311_v7 }
 0xedc   : > { %4868 = vmatpush3.msra.mxu1 %v3213_v57  ;;  %4896 = vmatprep.subr.mxu0 %v5067_v3 }
 0xedd   : > { %4869 = vmatprep.subr.mxu1 %v5067_v3  ;;  %4897 = vmatpush3.msra.mxu0 %v3310_v8 }
 0xede   : > { %4870 = vmatpush3.msra.mxu1 %v3212_v58  ;;  %4898 = vmatprep.subr.mxu0 %v5067_v3 }
 0xedf   : > { %4871 = vmatprep.subr.mxu1 %v5067_v3  ;;  %4899 = vmatpush3.msra.mxu0 %v3309_v9 }
 0xee0   : > { %4872 = vmatpush3.msra.mxu1 %v3211_v59  ;;  %4900 = vmatprep.subr.mxu0 %v5067_v3 }
 0xee1   : > { %4873 = vmatprep.subr.mxu1 %v5067_v3  ;;  %4901 = vmatpush3.msra.mxu0 %v3308_v10 }
 0xee2   : > { %4874 = vmatpush3.msra.mxu1 %v3210_v62  ;;  %4902 = vmatprep.subr.mxu0 %v5067_v3 }
 0xee3   : > { %4875 = vmatprep.subr.mxu1 %v5067_v3  ;;  %4903 = vmatpush3.msra.mxu0 %v3307_v11 }
 0xee4   : > { %4876 = vmatpush3.msra.mxu1 %v3209_v52  ;;  %4904 = vmatprep.subr.mxu0 %v5067_v3 }
 0xee5   : > { %4877 = vmatprep.subr.mxu1 %v5067_v3  ;;  %4905 = vmatpush3.msra.mxu0 %v3306_v60 }
 0xee6   : > { %4878 = vmatpush3.msra.mxu1 %v3208_v63  ;;  %4906 = vmatprep.subr.mxu0 %v5067_v3 }
 0xee7   : > { %4879 = vmatprep.subr.mxu1 %v5067_v3  ;;  %4907 = vmatpush3.msra.mxu0 %v3305_v61 }
 0xee8   : > { %4880 = vmatpush3.msra.mxu1 %v3207_v0  ;;  %4908 = vmatprep.subr.mxu0 %v5067_v3 }
 0xee9   : > { %4881 = vmatprep.subr.mxu1 %v5067_v3  ;;  %4909 = vmatpush3.msra.mxu0 %v3304_v12 }
 0xeea   : > { %4882 = vmatpush3.msra.mxu1 %v3206_v1  ;;  %4910 = vmatprep.subr.mxu0 %v5067_v3 }
 0xeeb   : > { %4883 = vmatprep.subr.mxu1 %v5067_v3  ;;  %4911 = vmatpush3.msra.mxu0 %v3303_v13 }
 0xeec   : > { %4884 = vmatpush3.msra.mxu1 %v3205_v2  ;;  %4912 = vmatprep.subr.mxu0 %v5067_v3 }
 0xeed   : > { %4885 = vmatprep.subr.mxu1 %v5067_v3  ;;  %4913 = vmatpush3.msra.mxu0 %v3302_v14 }
 0xeee   : > { %4886 = vmatpush3.msra.mxu1 %v3204_v4  ;;  %4914 = vmatprep.subr.mxu0 %v5067_v3 }
 0xeef   : > { %4887 = vmatprep.subr.mxu1 %v5067_v3  ;;  %4915 = vmatpush3.msra.mxu0 %v3301_v17 }
 0xef0   : > { %4888 = vmatpush3.msra.mxu1 %v3203_v5  ;;  %4916 = vmatprep.subr.mxu0 %v5067_v3 }
 0xef1   : > { %4917 = vmatpush3.msra.mxu0 %v3300_v18 }
 0xef2   : > { %4918 = vmatprep.subr.mxu0 %v5067_v3 }
 0xef3   : > { %4919 = vmatpush3.msra.mxu0 %v3299_v28 }
 0xef4   : > { %4920 = vmatprep.subr.mxu0 %v5067_v3 }
 0xef5   : > { %4921 = vmatpush3.msra.mxu0 %v3298_v29 }
 0xef6   : > { %4922 = vmatprep.subr.mxu0 %v5067_v3 }
 0xef7   : > { %4923 = vmatpush3.msra.mxu0 %v3297_v30 }
 0xf97   : > { %v3170_v47 = vpop.f32.mrf.mxu0 }
 0xf98   : > { %v3171_v34 = vadd.f32 %v3992_v46, %v3170_v47 }
 0xf99   : > { %v4856_v16 = vpop.f32.mrf.mxu0 }
 0xf9a   : > { %v3174_v48 = vadd.f32 %v5757_v15, %v3171_v34 }
 0xf9c   : > { %3177 = vadd.xlane.f32.xlu0 %v3174_v48 }
0x1025   : > { %v3178_v15 = vpop.xlane.xlu0 %3177 }
0x1026   : > { %v3180_v53 = vmul.f32 0.0078125, %v3178_v15 }
0x1028   : > { %v5921_v54 = vsub.f32 %v3174_v48, %v3180_v53  ;;  %v3997_v48 = vld [vmem:[%s959_s12] ss:$0 sm:$0xff] }
0x102a   : > { %v3182_v55 = vmul.f32 %v5921_v54, %v5921_v54 }
0x102c   : > { %3183 = vadd.xlane.f32.xlu1 %v3182_v55 }
0x10b5   : > { %v3184_v19 = vpop.xlane.xlu1 %3183 }
0x10b6   : > { %v3185_v20 = vmul.f32 0.0078125, %v3184_v19 }
0x10b8   : > { %v3186_v21 = vadd.f32 1e-05, %v3185_v20 }
0x10ba   : > { %5022 = vrsqrt.f32 %v3186_v21 }
0x10c7   : > { %v5023_v22 = vpop.eup %5022 }
0x10c8   : > { %v3188_v24 = vmul.f32 %v5023_v22, %v5921_v54 }
0x10ca   : > { %v3195_v26 = vmul.f32 %v3993_v23, %v3188_v24 }
0x10cc   : > { %v3202_v27 = vadd.f32 %v3994_v25, %v3195_v26 }
0x10ce   : > { %4890 = vmatmul.mubr.f32.vlgmr.msra.gmra.mxu1 %v3202_v27 }
0x118e   : > { %v3292_v32 = vpop.f32.mrf.mxu1 }
0x118f   : > { %v3293_v33 = vadd.f32 %v3995_v31, %v3292_v32 }
0x1190   : > { %v4891_v35 = vpop.f32.mrf.mxu1 }
0x1191   : > { %v3296_v36 = vmax.f32 %v3293_v33, 0.0 }
0x1193   : > { %4925 = vmatmul.mubr.f32.vlgmr.msra.gmra.mxu0 %v3296_v36 }
0x1253   : > { %v3386_v38 = vpop.f32.mrf.mxu0 }
0x1254   : > { %v3387_v3 = vadd.f32 %v3996_v37, %v3386_v38 }
0x1255   : > { %v4926_v39 = vpop.f32.mrf.mxu0 }
0x1256   : > { %v3390_v40 = vadd.f32 %v3387_v3, %v3202_v27 }
0x1258   : > { %3393 = vadd.xlane.f32.xlu0 %v3390_v40 }
0x12e1   : > { %v3394_v42 = vpop.xlane.xlu0 %3393 }
0x12e2   : > { %v3395_v43 = vmul.f32 0.0078125, %v3394_v42 }
0x12e4   : > { %v3396_v44 = vsub.f32 %v3390_v40, %v3395_v43 }
0x12e6   : > { %v3397_v45 = vmul.f32 %v3396_v44, %v3396_v44 }
0x12e8   : > { %3398 = vadd.xlane.f32.xlu1 %v3397_v45 }
0x1371   : > { %v3399_v46 = vpop.xlane.xlu1 %3398 }
0x1372   : > { %v3400_v47 = vmul.f32 0.0078125, %v3399_v46 }
0x1374   : > { %v3401_v34 = vadd.f32 1e-05, %v3400_v47 }
0x1376   : > { %5024 = vrsqrt.f32 %v3401_v34 }
0x1383   : > { %v5025_v16 = vpop.eup %5024 }
0x1384   : > { %v3403_v41 = vmul.f32 %v5025_v16, %v3396_v44 }
0x1386   : > { %v3410_v50 = vmul.f32 %v3997_v48, %v3403_v41  ;;  %3422 = sbr.rel (%p3999_p8) target bundleno = 5232 (0x1470), region = 112 }
0x1388   : > { %v3417_v51 = vadd.f32 %v3998_v49, %v3410_v50 }
0x138a   : > { %3418 = vst [vmem:[#allocation2] sm:$0xff] %v3417_v51 }
0x138b   : > { %v3438_v15 = vld [vmem:[%s6172_s27 + $0x78] sm:$0xff]  ;;  %v5069_v53 = vmov 0.0   ;;  %v3437_v54 = vld [vmem:[%s6173_s22 + $0x70] sm:$0xff]  ;;  %vm5070_vm4 = vmmov 0   ;;  %v3436_v55 = vld [vmem:[%s6173_s22 + $0x68] sm:$0xff] }
0x138c   : > { %4927 = vmatprep.subr.mxu0 %v5069_v53  ;;  %4959 = vmatprep.mubr.msk.f32.mxu0 %vm5070_vm4, %v5069_v53  ;;  %v3435_v56 = vld [vmem:[%s6173_s22 + $0x60] sm:$0xff]  ;;  %v3434_v57 = vld [vmem:[%s6173_s22 + $0x58] sm:$0xff]  ;;  %v3433_v58 = vld [vmem:[%s6173_s22 + $0x50] sm:$0xff] }
0x138d   : > { %4928 = vmatpush3.msra.mxu0 %v3438_v15  ;;  %v3432_v59 = vld [vmem:[%s6173_s22 + $0x48] sm:$0xff]  ;;  %v3431_v62 = vld [vmem:[%s6173_s22 + $0x40] sm:$0xff]  ;;  %v3430_v52 = vld [vmem:[%s6173_s22 + $0x38] sm:$0xff] }
0x138e   : > { %4929 = vmatprep.subr.mxu0 %v5069_v53  ;;  %v3429_v63 = vld [vmem:[%s6173_s22 + $0x30] sm:$0xff]  ;;  %v3428_v0 = vld [vmem:[%s6173_s22 + $0x28] sm:$0xff]  ;;  %v3427_v1 = vld [vmem:[%s6173_s22 + $0x20] sm:$0xff] }
0x138f   : > { %4930 = vmatpush3.msra.mxu0 %v3437_v54  ;;  %v3426_v2 = vld [vmem:[%s6173_s22 + $0x18] sm:$0xff]  ;;  %v3425_v4 = vld [vmem:[%s6173_s22 + $0x10] sm:$0xff]  ;;  %v3424_v5 = vld [vmem:[%s6173_s22 + $0x8] sm:$0xff] }
0x1390   : > { %4931 = vmatprep.subr.mxu0 %v5069_v53  ;;  %v3423_v6 = vld [vmem:[%s6173_s22] sm:$0xff] }
0x1391   : > { %4932 = vmatpush3.msra.mxu0 %v3436_v55  ;;  %v4000_v7 = vld [vmem:[%s6174_s25] ss:$0 sm:$0xff] }
0x1392   : > { %4933 = vmatprep.subr.mxu0 %v5069_v53 }
0x1393   : > { %4934 = vmatpush3.msra.mxu0 %v3435_v56 }
0x1394   : > { %4935 = vmatprep.subr.mxu0 %v5069_v53 }
0x1395   : > { %4936 = vmatpush3.msra.mxu0 %v3434_v57 }
0x1396   : > { %4937 = vmatprep.subr.mxu0 %v5069_v53 }
0x1397   : > { %4938 = vmatpush3.msra.mxu0 %v3433_v58 }
0x1398   : > { %4939 = vmatprep.subr.mxu0 %v5069_v53 }
0x1399   : > { %4940 = vmatpush3.msra.mxu0 %v3432_v59 }
0x139a   : > { %4941 = vmatprep.subr.mxu0 %v5069_v53 }
0x139b   : > { %4942 = vmatpush3.msra.mxu0 %v3431_v62 }
0x139c   : > { %4943 = vmatprep.subr.mxu0 %v5069_v53 }
0x139d   : > { %4944 = vmatpush3.msra.mxu0 %v3430_v52 }
0x139e   : > { %4945 = vmatprep.subr.mxu0 %v5069_v53 }
0x139f   : > { %4946 = vmatpush3.msra.mxu0 %v3429_v63 }
0x13a0   : > { %4947 = vmatprep.subr.mxu0 %v5069_v53 }
0x13a1   : > { %4948 = vmatpush3.msra.mxu0 %v3428_v0 }
0x13a2   : > { %4949 = vmatprep.subr.mxu0 %v5069_v53 }
0x13a3   : > { %4950 = vmatpush3.msra.mxu0 %v3427_v1 }
0x13a4   : > { %4951 = vmatprep.subr.mxu0 %v5069_v53 }
0x13a5   : > { %4952 = vmatpush3.msra.mxu0 %v3426_v2 }
0x13a6   : > { %4953 = vmatprep.subr.mxu0 %v5069_v53 }
0x13a7   : > { %4954 = vmatpush3.msra.mxu0 %v3425_v4 }
0x13a8   : > { %4955 = vmatprep.subr.mxu0 %v5069_v53 }
0x13a9   : > { %4956 = vmatpush3.msra.mxu0 %v3424_v5 }
0x13aa   : > { %4957 = vmatprep.subr.mxu0 %v5069_v53 }
0x13ab   : > { %4958 = vmatpush3.msra.mxu0 %v3423_v6 }
0x13ac   : > { %4960 = vmatmul.mubr.f32.vlgmr.msra.gmra.mxu0 %v3417_v51 }
0x146c   : > { %v3512_v8 = vpop.f32.mrf.mxu0 }
0x146d   : > { %v3513_v9 = vadd.f32 %v4000_v7, %v3512_v8 }
0x146e   : > { %v4961_v10 = vpop.f32.mrf.mxu0 }
0x146f   : > { %3516 = vst [vmem:[%s5308_s17] sm:$0xff] %v3513_v9 }
0x1470 PF: > { %s6175_s18 = sld [smem:[#allocation6_spill]] }
0x1471   : > { %s6176_s2 = sld [smem:[#allocation4_spill]] }
0x1472   : > { %s6177_s25 = sld [smem:[#allocation5_spill]] }
0x1473   : > { %s6178_s26 = sld [smem:[#allocation7_spill]] }
0x1474   : > { %s6179_s27 = sld [smem:[#allocation8_spill]] }
0x1476   : > { %s31_s3 = sadd.s32 1, %s6175_s18  }
0x1477   : > { %p28_p9 = scmp.ge.s32.totalorder %s31_s3, 10  }
0x1479   :  { %30 = sbr.rel (!%p28_p9) target bundleno = 20 (0x14), region = 217 }

</bundles_post_ra>
